<compile_context>
chip_gen: v7x
topology: tpu7x:2x2x1
jax: 0.10.0
libtpu: 0.0.40
codegen_flags: <defaults>
</compile_context>

<pallas_src>
import math
import functools

import jax
import jax.numpy as jnp
from jax import lax
from jax.experimental import pallas as pl
from jax.experimental.pallas import tpu as pltpu

EPS = 1e-12  # LayerNorm eps used in the reference implementation


def _layernorm(v, g, b):
    mean = jnp.mean(v, axis=-1, keepdims=True)
    var = jnp.mean(jnp.square(v - mean), axis=-1, keepdims=True)  # unbiased=False
    return (v - mean) * lax.rsqrt(var + EPS) * g + b


def encoder_layer_kernel(x_ref,
                         wq_ref, bq_ref, wk_ref, bk_ref, wv_ref, bv_ref,
                         wo_ref, bo_ref,
                         g1_ref, be1_ref,
                         w1_ref, b1_ref, w2_ref, b2_ref,
                         g2_ref, be2_ref,
                         o_ref,
                         k_sc, v_sc, attn_sc,
                         *, n_head, block_q, seq_len, compute_dtype):
    _, T_pad, C = x_ref.shape
    dh = C // n_head
    approx = compute_dtype != jnp.float32   # exact reciprocal on the f32 path

    x_view = x_ref.at[0]                    # [T_pad, C] view, no load yet

    # ---- K/V projections once per batch element; cached in persistent VMEM ----
    @pl.when(pl.program_id(1) == 0)
    def _():
        xall = x_view[...].astype(compute_dtype)                       # [T_pad, C]
        k = jnp.dot(xall, wk_ref[...],
                    preferred_element_type=jnp.float32) + bk_ref[...]
        v = jnp.dot(xall, wv_ref[...],
                    preferred_element_type=jnp.float32) + bv_ref[...]
        k_sc[...] = k.astype(compute_dtype)
        v_sc[...] = v.astype(compute_dtype)

    # ---- Q projection for this q-tile (1/sqrt(dh) already folded into wq/bq) ---
    start = pl.multiple_of(pl.program_id(1) * block_q, block_q)
    xq = x_view[pl.ds(start, block_q), :]                              # [tq, C]
    q = jnp.dot(xq.astype(compute_dtype), wq_ref[...],
                preferred_element_type=jnp.float32) + bq_ref[...]      # [tq, C] f32

    need_mask = seq_len < T_pad            # static (trace-time) decision
    if need_mask:
        col = lax.broadcasted_iota(jnp.int32, (1, T_pad), 1)
        kv_valid = col < seq_len

    # ---- per-head attention; heads assembled lane-dense into attn_sc ----------
    for h in range(n_head):
        sl = slice(h * dh, (h + 1) * dh)
        qh = q[:, sl].astype(compute_dtype)
        kh = k_sc[:, sl]                                               # [T_pad, dh]
        vh = v_sc[:, sl]
        # q @ k^T by contracting last dims directly (no materialized transpose)
        s = lax.dot_general(qh, kh, (((1,), (1,)), ((), ())),
                            preferred_element_type=jnp.float32)        # [tq, T_pad]
        if need_mask:
            s = jnp.where(kv_valid, s, jnp.float32(-1e30))
        s = s - jnp.max(s, axis=-1, keepdims=True)
        p = jnp.exp(s)
        l = jnp.sum(p, axis=-1, keepdims=True)                         # [tq, 1]
        head = jnp.dot(p.astype(compute_dtype), vh,
                       preferred_element_type=jnp.float32)             # [tq, dh]
        # softmax denominator applied on the small [tq, dh] tensor, not [tq, T]
        head = head * pl.reciprocal(l, approx=approx)
        attn_sc[:, sl] = head.astype(compute_dtype)

    # ---- one full-width output projection (K = C fills the MXU) ---------------
    attn = jnp.dot(attn_sc[...], wo_ref[...],
                   preferred_element_type=jnp.float32) + bo_ref[...]   # [tq, C]

    # residual + norm1 (f32 elementwise math)
    x1 = _layernorm(attn + xq.astype(jnp.float32), g1_ref[...], be1_ref[...])

    # ---- position-wise FFN -----------------------------------------------------
    h1 = jnp.maximum(jnp.dot(x1.astype(compute_dtype), w1_ref[...],
                             preferred_element_type=jnp.float32) + b1_ref[...],
                     0.0)                                              # relu
    h2 = jnp.dot(h1.astype(compute_dtype), w2_ref[...],
                 preferred_element_type=jnp.float32) + b2_ref[...]

    # residual + norm2
    x2 = _layernorm(h2 + x1, g2_ref[...], be2_ref[...])
    o_ref[0] = x2.astype(o_ref.dtype)


def encoder_layer_pallas(x, params, n_head, *, block_q=256,
                         compute_dtype=jnp.bfloat16, out_dtype=None):
    B, T, C = x.shape
    F = params["w1"].shape[0]
    dh = C // n_head
    out_dtype = x.dtype if out_dtype is None else out_dtype

    # q-tile size: multiple of 8 sublanes; pad T host-side so tiles divide evenly.
    bq = max(8, (min(block_q, T) // 8) * 8)
    num_q = -(-T // bq)
    T_pad = num_q * bq
    x_in = x if T_pad == T else jnp.pad(x, ((0, 0), (0, T_pad - T), (0, 0)))

    # Pre-transpose weights to [in, out]; fold softmax scale into wq/bq.
    scale = 1.0 / math.sqrt(dh)
    f32 = jnp.float32
    weights = [
        (params["wq"].T * scale).astype(compute_dtype),
        (params["bq"] * scale).astype(f32),
        params["wk"].T.astype(compute_dtype), params["bk"].astype(f32),
        params["wv"].T.astype(compute_dtype), params["bv"].astype(f32),
        params["wo"].T.astype(compute_dtype), params["bo"].astype(f32),
        params["g1"].astype(f32), params["be1"].astype(f32),
        params["w1"].T.astype(compute_dtype), params["b1"].astype(f32),
        params["w2"].T.astype(compute_dtype), params["b2"].astype(f32),
        params["g2"].astype(f32), params["be2"].astype(f32),
    ]

    def w_spec(w):
        nd = w.ndim
        idx = lambda b, qi, _nd=nd: (0,) * _nd
        try:
            # Constant block index -> single-buffer to halve weight VMEM.
            return pl.BlockSpec(w.shape, idx, pipeline_mode=pl.Buffered(1))
        except Exception:
            return pl.BlockSpec(w.shape, idx)

    # VMEM budget: single-buffered weights + double-buffered x/out blocks +
    # K/V/attn scratch + f32 intermediates, clamped to ~0.85x physical VMEM.
    csize = jnp.dtype(compute_dtype).itemsize
    weight_bytes = sum(int(w.size) * w.dtype.itemsize for w in weights)
    x_bytes = 2 * T_pad * C * x.dtype.itemsize
    o_bytes = 2 * bq * C * jnp.dtype(out_dtype).itemsize
    scratch_bytes = (2 * T_pad * C + bq * C) * csize
    inter_bytes = 4 * (bq * (4 * C + T_pad + F) + 2 * T_pad * C)
    need = weight_bytes + x_bytes + o_bytes + scratch_bytes + inter_bytes + (8 << 20)
    try:
        phys = int(getattr(pltpu.get_tpu_info(), "vmem_capacity_bytes", 64 << 20))
    except Exception:
        phys = 64 << 20
    cap = int(0.85 * phys)
    vmem_limit = int(min(max(need, 32 << 20), cap))

    flops = 2 * B * (4 * T_pad * C * C + 2 * T_pad * T_pad * C + 2 * T_pad * C * F)
    cost = pl.CostEstimate(
        flops=int(flops),
        transcendentals=int(B * n_head * T_pad * T_pad),
        bytes_accessed=int(B * T_pad * C *
                           (x.dtype.itemsize + jnp.dtype(out_dtype).itemsize)
                           + weight_bytes),
    )

    kern = functools.partial(encoder_layer_kernel, n_head=n_head, block_q=bq,
                             seq_len=T, compute_dtype=compute_dtype)
    out = pl.pallas_call(
        kern,
        out_shape=jax.ShapeDtypeStruct((B, T_pad, C), out_dtype),
        grid=(B, num_q),
        in_specs=[pl.BlockSpec((1, T_pad, C), lambda b, qi: (b, 0, 0))]
                 + [w_spec(w) for w in weights],
        out_specs=pl.BlockSpec((1, bq, C), lambda b, qi: (b, qi, 0)),
        scratch_shapes=[pltpu.VMEM((T_pad, C), compute_dtype),   # K cache
                        pltpu.VMEM((T_pad, C), compute_dtype),   # V cache
                        pltpu.VMEM((bq, C), compute_dtype)],     # head assembly
        compiler_params=pltpu.CompilerParams(
            # q axis must be sequential ("arbitrary") so the per-batch K/V cache
            # written at qi==0 is visible to later q-tiles; batch stays parallel.
            dimension_semantics=("parallel", "arbitrary"),
            vmem_limit_bytes=vmem_limit),
        cost_estimate=cost,
    )(x_in, *weights)
    return out if T_pad == T else out[:, :T, :]


def init_layer_params(key, d_model, ffn_hidden):
    ks = jax.random.split(key, 6)
    s = 0.02
    return {
        "wq": jax.random.normal(ks[0], (d_model, d_model), jnp.float32) * s,
        "bq": jnp.zeros((1, d_model), jnp.float32),
        "wk": jax.random.normal(ks[1], (d_model, d_model), jnp.float32) * s,
        "bk": jnp.zeros((1, d_model), jnp.float32),
        "wv": jax.random.normal(ks[2], (d_model, d_model), jnp.float32) * s,
        "bv": jnp.zeros((1, d_model), jnp.float32),
        "wo": jax.random.normal(ks[3], (d_model, d_model), jnp.float32) * s,
        "bo": jnp.zeros((1, d_model), jnp.float32),
        "g1": jnp.ones((1, d_model), jnp.float32),
        "be1": jnp.zeros((1, d_model), jnp.float32),
        "w1": jax.random.normal(ks[4], (ffn_hidden, d_model), jnp.float32) * s,
        "b1": jnp.zeros((1, ffn_hidden), jnp.float32),
        "w2": jax.random.normal(ks[5], (d_model, ffn_hidden), jnp.float32) * s,
        "b2": jnp.zeros((1, d_model), jnp.float32),
        "g2": jnp.ones((1, d_model), jnp.float32),
        "be2": jnp.zeros((1, d_model), jnp.float32),
    }


def transformer_forward(src, layer_params, n_head, **kw):
    # Transformer.forward: src_mask = None; run the encoder stack.
    x = src
    for p in layer_params:
        x = encoder_layer_pallas(x, p, n_head, **kw)
    return x


# --- pure-JAX reference (PyTorch semantics) for sanity check ---
def encoder_layer_ref(x, p, n_head):
    def lin(v, w, b):
        return v @ w.T + b
    B, T, C = x.shape
    dh = C // n_head
    q = lin(x, p["wq"], p["bq"])
    k = lin(x, p["wk"], p["bk"])
    v = lin(x, p["wv"], p["bv"])
    qh = q.reshape(B, T, n_head, dh).transpose(0, 2, 1, 3)
    kh = k.reshape(B, T, n_head, dh).transpose(0, 2, 1, 3)
    vh = v.reshape(B, T, n_head, dh).transpose(0, 2, 1, 3)
    s = jnp.einsum("bhtd,bhsd->bhts", qh, kh) / math.sqrt(dh)
    a = jax.nn.softmax(s, axis=-1)
    o = jnp.einsum("bhts,bhsd->bhtd", a, vh).transpose(0, 2, 1, 3).reshape(B, T, C)
    o = lin(o, p["wo"], p["bo"])

    def ln(v, g, b):
        m = v.mean(-1, keepdims=True)
        var = ((v - m) ** 2).mean(-1, keepdims=True)
        return (v - m) / jnp.sqrt(var + EPS) * g + b

    x1 = ln(o + x, p["g1"], p["be1"])
    h = jnp.maximum(lin(x1, p["w1"], p["b1"]), 0.0)
    h = lin(h, p["w2"], p["b2"])
    return ln(h + x1, p["g2"], p["be2"])


if __name__ == "__main__":
    # small shapes consistent with the module
    B, T, d_model = 2, 8, 32
    n_head, ffn_hidden, n_layers = 4, 64, 2

    key = jax.random.PRNGKey(0)
    key, xk = jax.random.split(key)
    src = jax.random.normal(xk, (B, T, d_model), jnp.float32)

    layer_keys = jax.random.split(key, n_layers)
    layer_params = [init_layer_params(k, d_model, ffn_hidden) for k in layer_keys]

    ref = src
    for p in layer_params:
        ref = encoder_layer_ref(ref, p, n_head)

    # f32 compute path: matches the PyTorch module numerics
    out = transformer_forward(src, layer_params, n_head,
                              compute_dtype=jnp.float32)
    out = jax.block_until_ready(out)
    assert out.shape == (B, T, d_model)
    err = float(jnp.max(jnp.abs(out - ref)))
    assert jnp.allclose(out, ref, atol=2e-3, rtol=2e-3), f"f32 max abs err {err}"

    # bf16 matmul-operand path (f32 accumulation, f32 softmax/LayerNorm)
    out_bf16 = transformer_forward(src, layer_params, n_head,
                                   compute_dtype=jnp.bfloat16)
    out_bf16 = jax.block_until_ready(out_bf16)
    err16 = float(jnp.max(jnp.abs(out_bf16 - ref)))
    assert jnp.allclose(out_bf16, ref, atol=5e-2, rtol=5e-2), \
        f"bf16 max abs err {err16}"

    # ragged-T path: T not a multiple of the q-tile -> host pad + in-kernel KV mask
    T2 = 12
    key, xk2 = jax.random.split(key)
    src2 = jax.random.normal(xk2, (B, T2, d_model), jnp.float32)
    p2 = layer_params[0]
    ref2 = encoder_layer_ref(src2, p2, n_head)
    out2 = encoder_layer_pallas(src2, p2, n_head, block_q=8,
                                compute_dtype=jnp.float32)
    out2 = jax.block_until_ready(out2)
    assert out2.shape == (B, T2, d_model)
    err2 = float(jnp.max(jnp.abs(out2 - ref2)))
    assert jnp.allclose(out2, ref2, atol=2e-3, rtol=2e-3), \
        f"ragged max abs err {err2}"

    print("KERNEL_OK")
</pallas_src>

<mosaic_0001>
module attributes {stable_mosaic.version = 11 : i64} {
  func.func @encoder_layer_kernel(%arg0: i32, %arg1: i32, %arg2: memref<1x8x32xf32, #tpu.memory_space<vmem>>, %arg3: memref<32x32xf32, #tpu.memory_space<vmem>>, %arg4: memref<1x32xf32, #tpu.memory_space<vmem>>, %arg5: memref<32x32xf32, #tpu.memory_space<vmem>>, %arg6: memref<1x32xf32, #tpu.memory_space<vmem>>, %arg7: memref<32x32xf32, #tpu.memory_space<vmem>>, %arg8: memref<1x32xf32, #tpu.memory_space<vmem>>, %arg9: memref<32x32xf32, #tpu.memory_space<vmem>>, %arg10: memref<1x32xf32, #tpu.memory_space<vmem>>, %arg11: memref<1x32xf32, #tpu.memory_space<vmem>>, %arg12: memref<1x32xf32, #tpu.memory_space<vmem>>, %arg13: memref<32x64xf32, #tpu.memory_space<vmem>>, %arg14: memref<1x64xf32, #tpu.memory_space<vmem>>, %arg15: memref<64x32xf32, #tpu.memory_space<vmem>>, %arg16: memref<1x32xf32, #tpu.memory_space<vmem>>, %arg17: memref<1x32xf32, #tpu.memory_space<vmem>>, %arg18: memref<1x32xf32, #tpu.memory_space<vmem>>, %arg19: memref<1x8x32xf32, #tpu.memory_space<vmem>>, %arg20: memref<8x32xf32, #tpu.memory_space<vmem>>, %arg21: memref<8x32xf32, #tpu.memory_space<vmem>>, %arg22: memref<8x32xf32, #tpu.memory_space<vmem>>) attributes {dimension_semantics = [#tpu.dimension_semantics<parallel>, #tpu.dimension_semantics<arbitrary>], iteration_bounds = array<i64: 2, 1>, scalar_prefetch = 0 : i64, scratch_operands = 3 : i64, tpu.core_type = #tpu.core_type<tc>, window_params = [{transform_indices = @transform_0, window_bounds = array<i64: 1, 8, 32>}, {pipeline_mode = #tpu.pipeline_mode<synchronous>, transform_indices = @transform_1, window_bounds = array<i64: 32, 32>}, {pipeline_mode = #tpu.pipeline_mode<synchronous>, transform_indices = @transform_2, window_bounds = array<i64: 1, 32>}, {pipeline_mode = #tpu.pipeline_mode<synchronous>, transform_indices = @transform_3, window_bounds = array<i64: 32, 32>}, {pipeline_mode = #tpu.pipeline_mode<synchronous>, transform_indices = @transform_4, window_bounds = array<i64: 1, 32>}, {pipeline_mode = #tpu.pipeline_mode<synchronous>, transform_indices = @transform_5, window_bounds = array<i64: 32, 32>}, {pipeline_mode = #tpu.pipeline_mode<synchronous>, transform_indices = @transform_6, window_bounds = array<i64: 1, 32>}, {pipeline_mode = #tpu.pipeline_mode<synchronous>, transform_indices = @transform_7, window_bounds = array<i64: 32, 32>}, {pipeline_mode = #tpu.pipeline_mode<synchronous>, transform_indices = @transform_8, window_bounds = array<i64: 1, 32>}, {pipeline_mode = #tpu.pipeline_mode<synchronous>, transform_indices = @transform_9, window_bounds = array<i64: 1, 32>}, {pipeline_mode = #tpu.pipeline_mode<synchronous>, transform_indices = @transform_10, window_bounds = array<i64: 1, 32>}, {pipeline_mode = #tpu.pipeline_mode<synchronous>, transform_indices = @transform_11, window_bounds = array<i64: 32, 64>}, {pipeline_mode = #tpu.pipeline_mode<synchronous>, transform_indices = @transform_12, window_bounds = array<i64: 1, 64>}, {pipeline_mode = #tpu.pipeline_mode<synchronous>, transform_indices = @transform_13, window_bounds = array<i64: 64, 32>}, {pipeline_mode = #tpu.pipeline_mode<synchronous>, transform_indices = @transform_14, window_bounds = array<i64: 1, 32>}, {pipeline_mode = #tpu.pipeline_mode<synchronous>, transform_indices = @transform_15, window_bounds = array<i64: 1, 32>}, {pipeline_mode = #tpu.pipeline_mode<synchronous>, transform_indices = @transform_16, window_bounds = array<i64: 1, 32>}, {transform_indices = @transform_17, window_bounds = array<i64: 1, 8, 32>}]} {
    %c0_i32 = arith.constant 0 : i32
    %0 = arith.cmpi eq, %arg1, %c0_i32 : i32
    %1 = arith.extui %0 : i1 to i32
    %c0_i32_0 = arith.constant 0 : i32
    %c0_i32_1 = arith.constant 0 : i32
    %2 = arith.cmpi ne, %1, %c0_i32_1 : i32
    scf.if %2 {
      %149 = arith.index_cast %c0_i32_0 : i32 to index
      %c0_85 = arith.constant 0 : index
      %c0_86 = arith.constant 0 : index
      %150 = vector.load %arg2[%149, %c0_85, %c0_86] : memref<1x8x32xf32, #tpu.memory_space<vmem>>, vector<1x8x32xf32>
      %151 = vector.shape_cast %150 : vector<1x8x32xf32> to vector<8x32xf32>
      %c0_87 = arith.constant 0 : index
      %c0_88 = arith.constant 0 : index
      %152 = vector.load %arg5[%c0_87, %c0_88] : memref<32x32xf32, #tpu.memory_space<vmem>>, vector<32x32xf32>
      %cst_89 = arith.constant dense<0.000000e+00> : vector<8x32xf32>
      %153 = tpu.matmul %151, %152, %cst_89 {dimension_numbers = #tpu.dot_dimension_numbers<[1], [0], [0], [1], [0, 0, 1, 1], [], []>} : vector<8x32xf32>, vector<32x32xf32>, vector<8x32xf32> -> vector<8x32xf32>
      %c0_90 = arith.constant 0 : index
      %c0_91 = arith.constant 0 : index
      %154 = vector.load %arg6[%c0_90, %c0_91] : memref<1x32xf32, #tpu.memory_space<vmem>>, vector<1x32xf32>
      %155 = vector.broadcast %154 : vector<1x32xf32> to vector<8x32xf32>
      %156 = arith.addf %153, %155 : vector<8x32xf32>
      %c0_92 = arith.constant 0 : index
      %c0_93 = arith.constant 0 : index
      %157 = vector.load %arg7[%c0_92, %c0_93] : memref<32x32xf32, #tpu.memory_space<vmem>>, vector<32x32xf32>
      %cst_94 = arith.constant dense<0.000000e+00> : vector<8x32xf32>
      %158 = tpu.matmul %151, %157, %cst_94 {dimension_numbers = #tpu.dot_dimension_numbers<[1], [0], [0], [1], [0, 0, 1, 1], [], []>} : vector<8x32xf32>, vector<32x32xf32>, vector<8x32xf32> -> vector<8x32xf32>
      %c0_95 = arith.constant 0 : index
      %c0_96 = arith.constant 0 : index
      %159 = vector.load %arg8[%c0_95, %c0_96] : memref<1x32xf32, #tpu.memory_space<vmem>>, vector<1x32xf32>
      %160 = vector.broadcast %159 : vector<1x32xf32> to vector<8x32xf32>
      %161 = arith.addf %158, %160 : vector<8x32xf32>
      %c0_97 = arith.constant 0 : index
      %c0_98 = arith.constant 0 : index
      %162 = vector.load %arg20[%c0_97, %c0_98] : memref<8x32xf32, #tpu.memory_space<vmem>>, vector<8x32xf32>
      tpu.vector_store %arg20[%c0_97, %c0_98], %156 {strides = array<i32>} : memref<8x32xf32, #tpu.memory_space<vmem>>, vector<8x32xf32>,
      %c0_99 = arith.constant 0 : index
      %c0_100 = arith.constant 0 : index
      %163 = vector.load %arg21[%c0_99, %c0_100] : memref<8x32xf32, #tpu.memory_space<vmem>>, vector<8x32xf32>
      tpu.vector_store %arg21[%c0_99, %c0_100], %161 {strides = array<i32>} : memref<8x32xf32, #tpu.memory_space<vmem>>, vector<8x32xf32>,
    } else {
    }
    %c8_i32 = arith.constant 8 : i32
    %3 = arith.muli %arg1, %c8_i32 : i32
    %4 = tpu.assume_multiple %3, 8 : i32
    %c0_i32_2 = arith.constant 0 : i32
    %c0_i32_3 = arith.constant 0 : i32
    %c0_i32_4 = arith.constant 0 : i32
    %5 = tpu.memref_slice %arg2[%c0_i32_2, %c0_i32_3, %c0_i32_4] : memref<1x8x32xf32, #tpu.memory_space<vmem>> -> memref<1x8x32xf32, #tpu.memory_space<vmem>>
    %6 = tpu.memref_squeeze %5 : memref<1x8x32xf32, #tpu.memory_space<vmem>> -> memref<8x32xf32, #tpu.memory_space<vmem>>
    %7 = arith.index_cast %4 : i32 to index
    %c0 = arith.constant 0 : index
    %8 = vector.load %6[%7, %c0] : memref<8x32xf32, #tpu.memory_space<vmem>>, vector<8x32xf32>
    %c0_5 = arith.constant 0 : index
    %c0_6 = arith.constant 0 : index
    %9 = vector.load %arg3[%c0_5, %c0_6] : memref<32x32xf32, #tpu.memory_space<vmem>>, vector<32x32xf32>
    %cst = arith.constant dense<0.000000e+00> : vector<8x32xf32>
    %10 = tpu.matmul %8, %9, %cst {dimension_numbers = #tpu.dot_dimension_numbers<[1], [0], [0], [1], [0, 0, 1, 1], [], []>} : vector<8x32xf32>, vector<32x32xf32>, vector<8x32xf32> -> vector<8x32xf32>
    %c0_7 = arith.constant 0 : index
    %c0_8 = arith.constant 0 : index
    %11 = vector.load %arg4[%c0_7, %c0_8] : memref<1x32xf32, #tpu.memory_space<vmem>>, vector<1x32xf32>
    %12 = vector.broadcast %11 : vector<1x32xf32> to vector<8x32xf32>
    %13 = arith.addf %10, %12 : vector<8x32xf32>
    %14 = vector.extract_strided_slice %13 {offsets = [0, 0], sizes = [8, 8], strides = [1, 1]} : vector<8x32xf32> to vector<8x8xf32>
    %c0_9 = arith.constant 0 : index
    %c0_10 = arith.constant 0 : index
    %15 = vector.load %arg20[%c0_9, %c0_10] : memref<8x32xf32, #tpu.memory_space<vmem>>, vector<8x8xf32>
    %c0_11 = arith.constant 0 : index
    %c0_12 = arith.constant 0 : index
    %16 = vector.load %arg21[%c0_11, %c0_12] : memref<8x32xf32, #tpu.memory_space<vmem>>, vector<8x8xf32>
    %cst_13 = arith.constant dense<0.000000e+00> : vector<8x8xf32>
    %17 = tpu.matmul %14, %15, %cst_13 {dimension_numbers = #tpu.dot_dimension_numbers<[1], [1], [0], [0], [0, 0, 1, 0], [], []>} : vector<8x8xf32>, vector<8x8xf32>, vector<8x8xf32> -> vector<8x8xf32>
    %cst_14 = arith.constant dense<0xFF800000> : vector<8xf32>
    %18 = vector.multi_reduction <maximumf>, %17, %cst_14 [1] : vector<8x8xf32> to vector<8xf32>
    %19 = vector.shape_cast %18 : vector<8xf32> to vector<8x1xf32>
    %20 = vector.broadcast %19 : vector<8x1xf32> to vector<8x8xf32>
    %21 = arith.subf %17, %20 : vector<8x8xf32>
    %22 = math.exp %21 : vector<8x8xf32>
    %cst_15 = arith.constant dense<0.000000e+00> : vector<8xf32>
    %23 = vector.multi_reduction <add>, %22, %cst_15 [1] : vector<8x8xf32> to vector<8xf32>
    %24 = vector.shape_cast %23 : vector<8xf32> to vector<8x1xf32>
    %cst_16 = arith.constant dense<0.000000e+00> : vector<8x8xf32>
    %25 = tpu.matmul %22, %16, %cst_16 {dimension_numbers = #tpu.dot_dimension_numbers<[1], [0], [0], [1], [0, 0, 1, 1], [], []>} : vector<8x8xf32>, vector<8x8xf32>, vector<8x8xf32> -> vector<8x8xf32>
    %26 = tpu.reciprocal %24 : vector<8x1xf32> -> vector<8x1xf32>
    %27 = vector.broadcast %26 : vector<8x1xf32> to vector<8x8xf32>
    %28 = arith.mulf %25, %27 : vector<8x8xf32>
    %c0_17 = arith.constant 0 : index
    %c0_18 = arith.constant 0 : index
    %29 = vector.load %arg22[%c0_17, %c0_18] : memref<8x32xf32, #tpu.memory_space<vmem>>, vector<8x8xf32>
    tpu.vector_store %arg22[%c0_17, %c0_18], %28 {strides = array<i32>} : memref<8x32xf32, #tpu.memory_space<vmem>>, vector<8x8xf32>,
    %30 = vector.extract_strided_slice %13 {offsets = [0, 8], sizes = [8, 8], strides = [1, 1]} : vector<8x32xf32> to vector<8x8xf32>
    %c0_19 = arith.constant 0 : index
    %c8 = arith.constant 8 : index
    %31 = vector.load %arg20[%c0_19, %c8] : memref<8x32xf32, #tpu.memory_space<vmem>>, vector<8x8xf32>
    %c0_20 = arith.constant 0 : index
    %c8_21 = arith.constant 8 : index
    %32 = vector.load %arg21[%c0_20, %c8_21] : memref<8x32xf32, #tpu.memory_space<vmem>>, vector<8x8xf32>
    %cst_22 = arith.constant dense<0.000000e+00> : vector<8x8xf32>
    %33 = tpu.matmul %30, %31, %cst_22 {dimension_numbers = #tpu.dot_dimension_numbers<[1], [1], [0], [0], [0, 0, 1, 0], [], []>} : vector<8x8xf32>, vector<8x8xf32>, vector<8x8xf32> -> vector<8x8xf32>
    %cst_23 = arith.constant dense<0xFF800000> : vector<8xf32>
    %34 = vector.multi_reduction <maximumf>, %33, %cst_23 [1] : vector<8x8xf32> to vector<8xf32>
    %35 = vector.shape_cast %34 : vector<8xf32> to vector<8x1xf32>
    %36 = vector.broadcast %35 : vector<8x1xf32> to vector<8x8xf32>
    %37 = arith.subf %33, %36 : vector<8x8xf32>
    %38 = math.exp %37 : vector<8x8xf32>
    %cst_24 = arith.constant dense<0.000000e+00> : vector<8xf32>
    %39 = vector.multi_reduction <add>, %38, %cst_24 [1] : vector<8x8xf32> to vector<8xf32>
    %40 = vector.shape_cast %39 : vector<8xf32> to vector<8x1xf32>
    %cst_25 = arith.constant dense<0.000000e+00> : vector<8x8xf32>
    %41 = tpu.matmul %38, %32, %cst_25 {dimension_numbers = #tpu.dot_dimension_numbers<[1], [0], [0], [1], [0, 0, 1, 1], [], []>} : vector<8x8xf32>, vector<8x8xf32>, vector<8x8xf32> -> vector<8x8xf32>
    %42 = tpu.reciprocal %40 : vector<8x1xf32> -> vector<8x1xf32>
    %43 = vector.broadcast %42 : vector<8x1xf32> to vector<8x8xf32>
    %44 = arith.mulf %41, %43 : vector<8x8xf32>
    %c0_26 = arith.constant 0 : index
    %c8_27 = arith.constant 8 : index
    %45 = vector.load %arg22[%c0_26, %c8_27] : memref<8x32xf32, #tpu.memory_space<vmem>>, vector<8x8xf32>
    tpu.vector_store %arg22[%c0_26, %c8_27], %44 {strides = array<i32>} : memref<8x32xf32, #tpu.memory_space<vmem>>, vector<8x8xf32>,
    %46 = vector.extract_strided_slice %13 {offsets = [0, 16], sizes = [8, 8], strides = [1, 1]} : vector<8x32xf32> to vector<8x8xf32>
    %c0_28 = arith.constant 0 : index
    %c16 = arith.constant 16 : index
    %47 = vector.load %arg20[%c0_28, %c16] : memref<8x32xf32, #tpu.memory_space<vmem>>, vector<8x8xf32>
    %c0_29 = arith.constant 0 : index
    %c16_30 = arith.constant 16 : index
    %48 = vector.load %arg21[%c0_29, %c16_30] : memref<8x32xf32, #tpu.memory_space<vmem>>, vector<8x8xf32>
    %cst_31 = arith.constant dense<0.000000e+00> : vector<8x8xf32>
    %49 = tpu.matmul %46, %47, %cst_31 {dimension_numbers = #tpu.dot_dimension_numbers<[1], [1], [0], [0], [0, 0, 1, 0], [], []>} : vector<8x8xf32>, vector<8x8xf32>, vector<8x8xf32> -> vector<8x8xf32>
    %cst_32 = arith.constant dense<0xFF800000> : vector<8xf32>
    %50 = vector.multi_reduction <maximumf>, %49, %cst_32 [1] : vector<8x8xf32> to vector<8xf32>
    %51 = vector.shape_cast %50 : vector<8xf32> to vector<8x1xf32>
    %52 = vector.broadcast %51 : vector<8x1xf32> to vector<8x8xf32>
    %53 = arith.subf %49, %52 : vector<8x8xf32>
    %54 = math.exp %53 : vector<8x8xf32>
    %cst_33 = arith.constant dense<0.000000e+00> : vector<8xf32>
    %55 = vector.multi_reduction <add>, %54, %cst_33 [1] : vector<8x8xf32> to vector<8xf32>
    %56 = vector.shape_cast %55 : vector<8xf32> to vector<8x1xf32>
    %cst_34 = arith.constant dense<0.000000e+00> : vector<8x8xf32>
    %57 = tpu.matmul %54, %48, %cst_34 {dimension_numbers = #tpu.dot_dimension_numbers<[1], [0], [0], [1], [0, 0, 1, 1], [], []>} : vector<8x8xf32>, vector<8x8xf32>, vector<8x8xf32> -> vector<8x8xf32>
    %58 = tpu.reciprocal %56 : vector<8x1xf32> -> vector<8x1xf32>
    %59 = vector.broadcast %58 : vector<8x1xf32> to vector<8x8xf32>
    %60 = arith.mulf %57, %59 : vector<8x8xf32>
    %c0_35 = arith.constant 0 : index
    %c16_36 = arith.constant 16 : index
    %61 = vector.load %arg22[%c0_35, %c16_36] : memref<8x32xf32, #tpu.memory_space<vmem>>, vector<8x8xf32>
    tpu.vector_store %arg22[%c0_35, %c16_36], %60 {strides = array<i32>} : memref<8x32xf32, #tpu.memory_space<vmem>>, vector<8x8xf32>,
    %62 = vector.extract_strided_slice %13 {offsets = [0, 24], sizes = [8, 8], strides = [1, 1]} : vector<8x32xf32> to vector<8x8xf32>
    %c0_37 = arith.constant 0 : index
    %c24 = arith.constant 24 : index
    %63 = vector.load %arg20[%c0_37, %c24] : memref<8x32xf32, #tpu.memory_space<vmem>>, vector<8x8xf32>
    %c0_38 = arith.constant 0 : index
    %c24_39 = arith.constant 24 : index
    %64 = vector.load %arg21[%c0_38, %c24_39] : memref<8x32xf32, #tpu.memory_space<vmem>>, vector<8x8xf32>
    %cst_40 = arith.constant dense<0.000000e+00> : vector<8x8xf32>
    %65 = tpu.matmul %62, %63, %cst_40 {dimension_numbers = #tpu.dot_dimension_numbers<[1], [1], [0], [0], [0, 0, 1, 0], [], []>} : vector<8x8xf32>, vector<8x8xf32>, vector<8x8xf32> -> vector<8x8xf32>
    %cst_41 = arith.constant dense<0xFF800000> : vector<8xf32>
    %66 = vector.multi_reduction <maximumf>, %65, %cst_41 [1] : vector<8x8xf32> to vector<8xf32>
    %67 = vector.shape_cast %66 : vector<8xf32> to vector<8x1xf32>
    %68 = vector.broadcast %67 : vector<8x1xf32> to vector<8x8xf32>
    %69 = arith.subf %65, %68 : vector<8x8xf32>
    %70 = math.exp %69 : vector<8x8xf32>
    %cst_42 = arith.constant dense<0.000000e+00> : vector<8xf32>
    %71 = vector.multi_reduction <add>, %70, %cst_42 [1] : vector<8x8xf32> to vector<8xf32>
    %72 = vector.shape_cast %71 : vector<8xf32> to vector<8x1xf32>
    %cst_43 = arith.constant dense<0.000000e+00> : vector<8x8xf32>
    %73 = tpu.matmul %70, %64, %cst_43 {dimension_numbers = #tpu.dot_dimension_numbers<[1], [0], [0], [1], [0, 0, 1, 1], [], []>} : vector<8x8xf32>, vector<8x8xf32>, vector<8x8xf32> -> vector<8x8xf32>
    %74 = tpu.reciprocal %72 : vector<8x1xf32> -> vector<8x1xf32>
    %75 = vector.broadcast %74 : vector<8x1xf32> to vector<8x8xf32>
    %76 = arith.mulf %73, %75 : vector<8x8xf32>
    %c0_44 = arith.constant 0 : index
    %c24_45 = arith.constant 24 : index
    %77 = vector.load %arg22[%c0_44, %c24_45] : memref<8x32xf32, #tpu.memory_space<vmem>>, vector<8x8xf32>
    tpu.vector_store %arg22[%c0_44, %c24_45], %76 {strides = array<i32>} : memref<8x32xf32, #tpu.memory_space<vmem>>, vector<8x8xf32>,
    %c0_46 = arith.constant 0 : index
    %c0_47 = arith.constant 0 : index
    %78 = vector.load %arg22[%c0_46, %c0_47] : memref<8x32xf32, #tpu.memory_space<vmem>>, vector<8x32xf32>
    %c0_48 = arith.constant 0 : index
    %c0_49 = arith.constant 0 : index
    %79 = vector.load %arg9[%c0_48, %c0_49] : memref<32x32xf32, #tpu.memory_space<vmem>>, vector<32x32xf32>
    %cst_50 = arith.constant dense<0.000000e+00> : vector<8x32xf32>
    %80 = tpu.matmul %78, %79, %cst_50 {dimension_numbers = #tpu.dot_dimension_numbers<[1], [0], [0], [1], [0, 0, 1, 1], [], []>} : vector<8x32xf32>, vector<32x32xf32>, vector<8x32xf32> -> vector<8x32xf32>
    %c0_51 = arith.constant 0 : index
    %c0_52 = arith.constant 0 : index
    %81 = vector.load %arg10[%c0_51, %c0_52] : memref<1x32xf32, #tpu.memory_space<vmem>>, vector<1x32xf32>
    %82 = vector.broadcast %81 : vector<1x32xf32> to vector<8x32xf32>
    %83 = arith.addf %80, %82 : vector<8x32xf32>
    %84 = arith.addf %83, %8 : vector<8x32xf32>
    %c0_53 = arith.constant 0 : index
    %c0_54 = arith.constant 0 : index
    %85 = vector.load %arg11[%c0_53, %c0_54] : memref<1x32xf32, #tpu.memory_space<vmem>>, vector<1x32xf32>
    %c0_55 = arith.constant 0 : index
    %c0_56 = arith.constant 0 : index
    %86 = vector.load %arg12[%c0_55, %c0_56] : memref<1x32xf32, #tpu.memory_space<vmem>>, vector<1x32xf32>
    %cst_57 = arith.constant dense<0.000000e+00> : vector<8xf32>
    %87 = vector.multi_reduction <add>, %84, %cst_57 [1] : vector<8x32xf32> to vector<8xf32>
    %88 = vector.shape_cast %87 : vector<8xf32> to vector<8x1xf32>
    %cst_58 = arith.constant 3.200000e+01 : f32
    %89 = vector.broadcast %cst_58 : f32 to vector<8x1xf32>
    %90 = arith.divf %88, %89 : vector<8x1xf32>
    %91 = vector.broadcast %90 : vector<8x1xf32> to vector<8x32xf32>
    %92 = arith.subf %84, %91 : vector<8x32xf32>
    %93 = arith.mulf %92, %92 : vector<8x32xf32>
    %cst_59 = arith.constant dense<0.000000e+00> : vector<8xf32>
    %94 = vector.multi_reduction <add>, %93, %cst_59 [1] : vector<8x32xf32> to vector<8xf32>
    %95 = vector.shape_cast %94 : vector<8xf32> to vector<8x1xf32>
    %cst_60 = arith.constant 3.200000e+01 : f32
    %96 = vector.broadcast %cst_60 : f32 to vector<8x1xf32>
    %97 = arith.divf %95, %96 : vector<8x1xf32>
    %98 = vector.broadcast %90 : vector<8x1xf32> to vector<8x32xf32>
    %99 = arith.subf %84, %98 : vector<8x32xf32>
    %cst_61 = arith.constant 9.99999996E-13 : f32
    %100 = vector.broadcast %cst_61 : f32 to vector<8x1xf32>
    %101 = arith.addf %97, %100 : vector<8x1xf32>
    %102 = math.rsqrt %101 : vector<8x1xf32>
    %103 = vector.broadcast %102 : vector<8x1xf32> to vector<8x32xf32>
    %104 = arith.mulf %99, %103 : vector<8x32xf32>
    %105 = vector.broadcast %85 : vector<1x32xf32> to vector<8x32xf32>
    %106 = arith.mulf %104, %105 : vector<8x32xf32>
    %107 = vector.broadcast %86 : vector<1x32xf32> to vector<8x32xf32>
    %108 = arith.addf %106, %107 : vector<8x32xf32>
    %c0_62 = arith.constant 0 : index
    %c0_63 = arith.constant 0 : index
    %109 = vector.load %arg13[%c0_62, %c0_63] : memref<32x64xf32, #tpu.memory_space<vmem>>, vector<32x64xf32>
    %cst_64 = arith.constant dense<0.000000e+00> : vector<8x64xf32>
    %110 = tpu.matmul %108, %109, %cst_64 {dimension_numbers = #tpu.dot_dimension_numbers<[1], [0], [0], [1], [0, 0, 1, 1], [], []>} : vector<8x32xf32>, vector<32x64xf32>, vector<8x64xf32> -> vector<8x64xf32>
    %c0_65 = arith.constant 0 : index
    %c0_66 = arith.constant 0 : index
    %111 = vector.load %arg14[%c0_65, %c0_66] : memref<1x64xf32, #tpu.memory_space<vmem>>, vector<1x64xf32>
    %112 = vector.broadcast %111 : vector<1x64xf32> to vector<8x64xf32>
    %113 = arith.addf %110, %112 : vector<8x64xf32>
    %cst_67 = arith.constant 0.000000e+00 : f32
    %114 = vector.broadcast %cst_67 : f32 to vector<8x64xf32>
    %115 = arith.maximumf %113, %114 : vector<8x64xf32>
    %c0_68 = arith.constant 0 : index
    %c0_69 = arith.constant 0 : index
    %116 = vector.load %arg15[%c0_68, %c0_69] : memref<64x32xf32, #tpu.memory_space<vmem>>, vector<64x32xf32>
    %cst_70 = arith.constant dense<0.000000e+00> : vector<8x32xf32>
    %117 = tpu.matmul %115, %116, %cst_70 {dimension_numbers = #tpu.dot_dimension_numbers<[1], [0], [0], [1], [0, 0, 1, 1], [], []>} : vector<8x64xf32>, vector<64x32xf32>, vector<8x32xf32> -> vector<8x32xf32>
    %c0_71 = arith.constant 0 : index
    %c0_72 = arith.constant 0 : index
    %118 = vector.load %arg16[%c0_71, %c0_72] : memref<1x32xf32, #tpu.memory_space<vmem>>, vector<1x32xf32>
    %119 = vector.broadcast %118 : vector<1x32xf32> to vector<8x32xf32>
    %120 = arith.addf %117, %119 : vector<8x32xf32>
    %121 = arith.addf %120, %108 : vector<8x32xf32>
    %c0_73 = arith.constant 0 : index
    %c0_74 = arith.constant 0 : index
    %122 = vector.load %arg17[%c0_73, %c0_74] : memref<1x32xf32, #tpu.memory_space<vmem>>, vector<1x32xf32>
    %c0_75 = arith.constant 0 : index
    %c0_76 = arith.constant 0 : index
    %123 = vector.load %arg18[%c0_75, %c0_76] : memref<1x32xf32, #tpu.memory_space<vmem>>, vector<1x32xf32>
    %cst_77 = arith.constant dense<0.000000e+00> : vector<8xf32>
    %124 = vector.multi_reduction <add>, %121, %cst_77 [1] : vector<8x32xf32> to vector<8xf32>
    %125 = vector.shape_cast %124 : vector<8xf32> to vector<8x1xf32>
    %cst_78 = arith.constant 3.200000e+01 : f32
    %126 = vector.broadcast %cst_78 : f32 to vector<8x1xf32>
    %127 = arith.divf %125, %126 : vector<8x1xf32>
    %128 = vector.broadcast %127 : vector<8x1xf32> to vector<8x32xf32>
    %129 = arith.subf %121, %128 : vector<8x32xf32>
    %130 = arith.mulf %129, %129 : vector<8x32xf32>
    %cst_79 = arith.constant dense<0.000000e+00> : vector<8xf32>
    %131 = vector.multi_reduction <add>, %130, %cst_79 [1] : vector<8x32xf32> to vector<8xf32>
    %132 = vector.shape_cast %131 : vector<8xf32> to vector<8x1xf32>
    %cst_80 = arith.constant 3.200000e+01 : f32
    %133 = vector.broadcast %cst_80 : f32 to vector<8x1xf32>
    %134 = arith.divf %132, %133 : vector<8x1xf32>
    %135 = vector.broadcast %127 : vector<8x1xf32> to vector<8x32xf32>
    %136 = arith.subf %121, %135 : vector<8x32xf32>
    %cst_81 = arith.constant 9.99999996E-13 : f32
    %137 = vector.broadcast %cst_81 : f32 to vector<8x1xf32>
    %138 = arith.addf %134, %137 : vector<8x1xf32>
    %139 = math.rsqrt %138 : vector<8x1xf32>
    %140 = vector.broadcast %139 : vector<8x1xf32> to vector<8x32xf32>
    %141 = arith.mulf %136, %140 : vector<8x32xf32>
    %142 = vector.broadcast %122 : vector<1x32xf32> to vector<8x32xf32>
    %143 = arith.mulf %141, %142 : vector<8x32xf32>
    %144 = vector.broadcast %123 : vector<1x32xf32> to vector<8x32xf32>
    %145 = arith.addf %143, %144 : vector<8x32xf32>
    %c0_82 = arith.constant 0 : index
    %c0_83 = arith.constant 0 : index
    %c0_84 = arith.constant 0 : index
    %146 = vector.load %arg19[%c0_82, %c0_83, %c0_84] : memref<1x8x32xf32, #tpu.memory_space<vmem>>, vector<1x8x32xf32>
    %147 = vector.shape_cast %146 : vector<1x8x32xf32> to vector<8x32xf32>
    %148 = vector.shape_cast %145 : vector<8x32xf32> to vector<1x8x32xf32>
    tpu.vector_store %arg19[%c0_82, %c0_83, %c0_84], %148 {strides = array<i32>} : memref<1x8x32xf32, #tpu.memory_space<vmem>>, vector<1x8x32xf32>,
    return
  }
  func.func @transform_0(%arg0: i32, %arg1: i32) -> (i32, i32, i32) {
    %c0_i32 = arith.constant 0 : i32
    %c0_i32_0 = arith.constant 0 : i32
    %c0_i32_1 = arith.constant 0 : i32
    return %arg0, %c0_i32, %c0_i32_0 : i32, i32, i32
  }
  func.func @transform_1(%arg0: i32, %arg1: i32) -> (i32, i32) {
    %c0_i32 = arith.constant 0 : i32
    %c0_i32_0 = arith.constant 0 : i32
    %c0_i32_1 = arith.constant 0 : i32
    return %c0_i32, %c0_i32_0 : i32, i32
  }
  func.func @transform_2(%arg0: i32, %arg1: i32) -> (i32, i32) {
    %c0_i32 = arith.constant 0 : i32
    %c0_i32_0 = arith.constant 0 : i32
    %c0_i32_1 = arith.constant 0 : i32
    return %c0_i32, %c0_i32_0 : i32, i32
  }
  func.func @transform_3(%arg0: i32, %arg1: i32) -> (i32, i32) {
    %c0_i32 = arith.constant 0 : i32
    %c0_i32_0 = arith.constant 0 : i32
    %c0_i32_1 = arith.constant 0 : i32
    return %c0_i32, %c0_i32_0 : i32, i32
  }
  func.func @transform_4(%arg0: i32, %arg1: i32) -> (i32, i32) {
    %c0_i32 = arith.constant 0 : i32
    %c0_i32_0 = arith.constant 0 : i32
    %c0_i32_1 = arith.constant 0 : i32
    return %c0_i32, %c0_i32_0 : i32, i32
  }
  func.func @transform_5(%arg0: i32, %arg1: i32) -> (i32, i32) {
    %c0_i32 = arith.constant 0 : i32
    %c0_i32_0 = arith.constant 0 : i32
    %c0_i32_1 = arith.constant 0 : i32
    return %c0_i32, %c0_i32_0 : i32, i32
  }
  func.func @transform_6(%arg0: i32, %arg1: i32) -> (i32, i32) {
    %c0_i32 = arith.constant 0 : i32
    %c0_i32_0 = arith.constant 0 : i32
    %c0_i32_1 = arith.constant 0 : i32
    return %c0_i32, %c0_i32_0 : i32, i32
  }
  func.func @transform_7(%arg0: i32, %arg1: i32) -> (i32, i32) {
    %c0_i32 = arith.constant 0 : i32
    %c0_i32_0 = arith.constant 0 : i32
    %c0_i32_1 = arith.constant 0 : i32
    return %c0_i32, %c0_i32_0 : i32, i32
  }
  func.func @transform_8(%arg0: i32, %arg1: i32) -> (i32, i32) {
    %c0_i32 = arith.constant 0 : i32
    %c0_i32_0 = arith.constant 0 : i32
    %c0_i32_1 = arith.constant 0 : i32
    return %c0_i32, %c0_i32_0 : i32, i32
  }
  func.func @transform_9(%arg0: i32, %arg1: i32) -> (i32, i32) {
    %c0_i32 = arith.constant 0 : i32
    %c0_i32_0 = arith.constant 0 : i32
    %c0_i32_1 = arith.constant 0 : i32
    return %c0_i32, %c0_i32_0 : i32, i32
  }
  func.func @transform_10(%arg0: i32, %arg1: i32) -> (i32, i32) {
    %c0_i32 = arith.constant 0 : i32
    %c0_i32_0 = arith.constant 0 : i32
    %c0_i32_1 = arith.constant 0 : i32
    return %c0_i32, %c0_i32_0 : i32, i32
  }
  func.func @transform_11(%arg0: i32, %arg1: i32) -> (i32, i32) {
    %c0_i32 = arith.constant 0 : i32
    %c0_i32_0 = arith.constant 0 : i32
    %c0_i32_1 = arith.constant 0 : i32
    return %c0_i32, %c0_i32_0 : i32, i32
  }
  func.func @transform_12(%arg0: i32, %arg1: i32) -> (i32, i32) {
    %c0_i32 = arith.constant 0 : i32
    %c0_i32_0 = arith.constant 0 : i32
    %c0_i32_1 = arith.constant 0 : i32
    return %c0_i32, %c0_i32_0 : i32, i32
  }
  func.func @transform_13(%arg0: i32, %arg1: i32) -> (i32, i32) {
    %c0_i32 = arith.constant 0 : i32
    %c0_i32_0 = arith.constant 0 : i32
    %c0_i32_1 = arith.constant 0 : i32
    return %c0_i32, %c0_i32_0 : i32, i32
  }
  func.func @transform_14(%arg0: i32, %arg1: i32) -> (i32, i32) {
    %c0_i32 = arith.constant 0 : i32
    %c0_i32_0 = arith.constant 0 : i32
    %c0_i32_1 = arith.constant 0 : i32
    return %c0_i32, %c0_i32_0 : i32, i32
  }
  func.func @transform_15(%arg0: i32, %arg1: i32) -> (i32, i32) {
    %c0_i32 = arith.constant 0 : i32
    %c0_i32_0 = arith.constant 0 : i32
    %c0_i32_1 = arith.constant 0 : i32
    return %c0_i32, %c0_i32_0 : i32, i32
  }
  func.func @transform_16(%arg0: i32, %arg1: i32) -> (i32, i32) {
    %c0_i32 = arith.constant 0 : i32
    %c0_i32_0 = arith.constant 0 : i32
    %c0_i32_1 = arith.constant 0 : i32
    return %c0_i32, %c0_i32_0 : i32, i32
  }
  func.func @transform_17(%arg0: i32, %arg1: i32) -> (i32, i32, i32) {
    %c0_i32 = arith.constant 0 : i32
    %c0_i32_0 = arith.constant 0 : i32
    return %arg0, %arg1, %c0_i32 : i32, i32, i32
  }
}

</mosaic_0001>

<bundles_post_ra>
// kernel: tpu_custom_call.1
= control target key start
LH: loop header
LB: loop body
LE: loop exit
PB: predicated region body
PF: predicated region fallthrough
CT: control target
= control target key end

     0   :  { %s3079_s0 = inlined_call_operand.hbm [shape: f32[2,8,32], index: 0, kind: input, shape index: {}]   ;;  %s3080_s1 = inlined_call_operand.vmem [shape: f32[32,32], index: 1, kind: input, shape index: {}]   ;;  %s3081_s2 = inlined_call_operand.vmem [shape: f32[1,32], index: 2, kind: input, shape index: {}]   ;;  %s3082_s3 = inlined_call_operand.vmem [shape: f32[32,32], index: 3, kind: input, shape index: {}]   ;;  %s3083_s4 = inlined_call_operand.vmem [shape: f32[1,32], index: 4, kind: input, shape index: {}]   ;;  %s3084_s5 = inlined_call_operand.vmem [shape: f32[32,32], index: 5, kind: input, shape index: {}]   ;;  %s3085_s6 = inlined_call_operand.vmem [shape: f32[1,32], index: 6, kind: input, shape index: {}]   ;;  %s3086_s7 = inlined_call_operand.hbm [shape: f32[32,32], index: 7, kind: input, shape index: {}]   ;;  %s3087_s8 = inlined_call_operand.vmem [shape: f32[1,32], index: 8, kind: input, shape index: {}]   ;;  %s3088_s9 = inlined_call_operand.vmem [shape: f32[1,32], index: 9, kind: input, shape index: {}]   ;;  %s3089_s10 = inlined_call_operand.vmem [shape: f32[1,32], index: 10, kind: input, shape index: {}]   ;;  %s3090_s11 = inlined_call_operand.hbm [shape: f32[32,64], index: 11, kind: input, shape index: {}]   ;;  %s3091_s12 = inlined_call_operand.vmem [shape: f32[1,64], index: 12, kind: input, shape index: {}]   ;;  %s3092_s13 = inlined_call_operand.vmem [shape: f32[64,32], index: 13, kind: input, shape index: {}]   ;;  %s3093_s14 = inlined_call_operand.vmem [shape: f32[1,32], index: 14, kind: input, shape index: {}]   ;;  %s3094_s15 = inlined_call_operand.vmem [shape: f32[1,32], index: 15, kind: input, shape index: {}]   ;;  %s3095_s16 = inlined_call_operand.vmem [shape: f32[1,32], index: 16, kind: input, shape index: {}]   ;;  %s3096_s17 = inlined_call_operand.hbm [shape: f32[2,8,32], index: 17, kind: output, shape index: {}]  }
   0x1   :  { %3106 = sst [smem:[#allocation18_spill]] %s3079_s0 }
   0x2   :  { %3107 = sst [smem:[#allocation19_spill]] %s3080_s1 }
   0x3   :  { %3108 = sst [smem:[#allocation20_spill]] %s3081_s2 }
   0x4   :  { %3109 = sst [smem:[#allocation21_spill]] %s3082_s3 }
   0x5   :  { %3110 = sst [smem:[#allocation22_spill]] %s3083_s4 }
   0x6   :  { %3111 = sst [smem:[#allocation23_spill]] %s3088_s9 }
   0x7   :  { %3112 = sst [smem:[#allocation24_spill]] %s3089_s10 }
   0x8   :  { %3113 = sst [smem:[#allocation25_spill]] %s3091_s12 }
   0x9   :  { %3114 = sst [smem:[#allocation26_spill]] %s3093_s14 }
   0xa   :  { %3115 = sst [smem:[#allocation27_spill]] %s3094_s15 }
   0xb   :  { %3116 = sst [smem:[#allocation28_spill]] %s3095_s16 }
   0xc   :  { %3117 = sst [smem:[#allocation29_spill]] %s3096_s17 }
   0xd   :  { %22 = vsyncpa [#allocation6], 0 }
   0xe   :  { %24 = vsyncpa [#allocation6 + $0x1], 0 }
   0xf   :  { %25 = vsyncpa [#allocation9], 0 }
  0x10   :  { %26 = vsyncpa [#allocation7], 0 }
  0x11   :  { %28 = vsyncpa [#allocation7 + $0x1], 0  ;;  %s2637_s24 = smov 0   ;;  %s2639_s25 = smov 0  }
  0x12   :  { %s2641_s26 = smov 0   ;;  %s2643_s27 = smov 0  }
  0x13   :  { %s2645_s28 = smov 0   ;;  %s2647_s29 = smov 0  }
  0x14 LB: > { %3118 = sst [smem:[#allocation15_spill]] %s2510_s24  ;;  %s1993_s0 = sadd.s32 4294967295, %s2530_s29   ;;  %s2530_s29 = sphi %s2647_s29, %s34_s29   ;;  %s2526_s28 = sphi %s2645_s28, %s3153_s28   ;;  %s2522_s27 = sphi %s2643_s27, %s3152_s27   ;;  %s2518_s26 = sphi %s2641_s26, %s3151_s26   ;;  %s2514_s25 = sphi %s2639_s25, %s3150_s25   ;;  %s2510_s24 = sphi %s2637_s24, %s3149_s24  }
  0x15   : > { %3119 = sst [smem:[#allocation16_spill]] %s2522_s27  ;;  %s1994_s30 = sadd.s32 4294967294, %s2530_s29  }
  0x16   : > { %p66_p0 = scmp.ne.s32.totalorder %s2514_s25, %s2510_s24  ;;  %p2671_p1 = scmp.eq.s32.totalorder %s1993_s0, 0 }
  0x17   : > { %p2675_p2 = scmp.eq.s32.totalorder %s1993_s0, 1  ;;  %p434_p3 = scmp.eq.s32.totalorder %s1994_s30, 1 }
  0x18   : > { %s3120_s18 = scalar_select %p2671_p1, 1, 0 }
  0x19   : > { %p2681_p4 = por %p2671_p1, %p66_p0  ;;  %p1995_p5 = scmp.ge.s32.totalorder %s2530_s29, 1 }
  0x1a   : > { %p2686_p6 = por %p434_p3, %p66_p0  ;;  %p441_p7 = scmp.lt.s32.totalorder %s2530_s29, 3 }
  0x1b   : > { %s3122_s1 = scalar_select %p2681_p4, 1, 0 }
  0x1c   : > { %s3123_s20 = scalar_select %p2686_p6, 1, 0 }
  0x1d   : > { %p2691_p8 = pnand %p1995_p5, %p441_p7  ;;  %s2532_s22 = smov [#allocation8]  }
  0x1e   : > { %3124 = sst [smem:[#allocation17_spill]] %s3123_s20  ;;  %s471_s23 = sshll.u32 %s2532_s22, 4  ;;  %s2695_s23 = int_to_ptr.vmem [resolvable:$true] %s471_s23 }
  0x1f   : > { %p2256_p9 = pneg %p2691_p8  ;;  %s2533_s30 = smov [#allocation10]  }
  0x20   : > { %s493_s20 = sshll.u32 %s2533_s30, 4  ;;  %s2358_s22 = scalar_lea.hbm %s3086_s7, 512  ;;  %s2706_s20 = int_to_ptr.vmem [resolvable:$true] %s493_s20 }
  0x21   : > { %p2702_p11 = pnand %p2256_p9, %p2671_p1  ;;  %p2359_p12 = scmp.ne.s32.totalorder %s3086_s7, %s2358_s22 }
  0x22   : > { %p2365_p5 = scmp.lt.u32.totalorder %s2358_s22, %s3086_s7 }
  0x23   : > { %p2360_p13 = pneg %p2702_p11 }
  0x25   : > { %p2361_p0 = pnand %p2360_p13, %p2359_p12 }
  0x27   : > { %p2362_p3 = pneg %p2361_p0 }
  0x29   : > { %p2367_p7 = pnand %p2365_p5, %p2362_p3 }
  0x2b   : > { %2370 = shalt.err (!%p2367_p7)
}
  0x2c   : > { %s2371_s17 = scalar_lea.vmem %s2695_s23, 512  ;;  %p2379_p1 = scmp.lt.s32.totalorder %s2695_s23, %s2695_s23 }
  0x2d   : > { %p2372_p9 = scmp.ne.s32.totalorder %s2695_s23, %s2371_s17  ;;  %p2380_p12 = scmp.lt.s32.totalorder %s2371_s17, %s2371_s17 }
  0x2f   : > { %p2374_p10 = pnand %p2372_p9, %p2360_p13  ;;  %p2381_p0 = por %p2380_p12, %p2379_p1 }
  0x31   : > { %p2375_p6 = pneg %p2374_p10 }
  0x33   : > { %p2382_p4 = pnand %p2381_p0, %p2375_p6 }
  0x35   : > { %2385 = shalt.err (!%p2382_p4)
}
  0x36   : > { %s2534_s14 = smov 128   ;;  %s2535_s15 = smov 8  }
  0x37   : > { %2259 = dma.hbm_to_vmem [thread:$0]  (!%p2702_p11), %s3086_s7, 512, %s2695_s23, [#allocation9], %s2534_s14, %s2534_s14, %s2535_s15  }
  0x38   : > { %s2386_s22 = scalar_lea.hbm %s3090_s11, 512 }
  0x39   : > { %p2387_p1 = scmp.ne.s32.totalorder %s3090_s11, %s2386_s22  ;;  %p2393_p10 = scmp.lt.u32.totalorder %s2386_s22, %s3090_s11 }
  0x3b   : > { %p2389_p4 = pnand %p2387_p1, %p2360_p13 }
  0x3d   : > { %p2390_p6 = pneg %p2389_p4 }
  0x3f   : > { %p2395_p3 = pnand %p2393_p10, %p2390_p6 }
  0x41   : > { %2398 = shalt.err (!%p2395_p3)
}
  0x42   : > { %s2399_s23 = scalar_lea.vmem %s2706_s20, 512  ;;  %p2407_p12 = scmp.lt.s32.totalorder %s2706_s20, %s2706_s20 }
  0x43   : > { %p2400_p5 = scmp.ne.s32.totalorder %s2706_s20, %s2399_s23  ;;  %p2408_p0 = scmp.lt.s32.totalorder %s2399_s23, %s2399_s23 }
  0x45   : > { %p2402_p7 = pnand %p2400_p5, %p2360_p13  ;;  %p2409_p1 = por %p2408_p0, %p2407_p12 }
  0x47   : > { %p2403_p9 = pneg %p2402_p7 }
  0x49   : > { %p2410_p4 = pnand %p2409_p1, %p2403_p9 }
  0x4b   : > { %2413 = shalt.err (!%p2410_p4)
}
  0x4c   : > { %2262 = dma.hbm_to_vmem [thread:$0]  (!%p2702_p11), %s3090_s11, 512, %s2706_s20, [#allocation9], %s2534_s14, %s2534_s14, %s2535_s15  }
  0x4d   : > { %s46_s12 = sadd.s32 1, %s2526_s28  ;;  %s53_s16 = sadd.s32 1, %s2518_s26 }
  0x4e   : > { %p48_p13 = scmp.ge.s32.totalorder %s46_s12, 2  ;;  %p60_p6 = scmp.ne.s32.totalorder %s2518_s26, %s2514_s25 }
  0x4f   : > { %p61_p10 = scmp.eq.s32.totalorder %s2530_s29, 0  ;;  %p2273_p3 = scmp.lt.s32.totalorder %s2530_s29, 2 }
  0x50   : > { %s3155_s12 = smov (%p48_p13, %s46_s12), 0  ;;  %p2770_p7 = por %p2675_p2, %p60_p6 }
  0x51   : > { %p62_p5 = por %p61_p10, %p60_p6  ;;  %s50_s24 = ssub.s32 %s2526_s28, %s3155_s12 }
  0x52   : > { %s3127_s0 = scalar_select %p2770_p7, 1, 0 }
  0x53   : > { %s522_s27 = sand.u32 1, %s2518_s26   ;;  %p51_p9 = scmp.eq.s32.totalorder %s50_s24, 0 }
  0x54   : > { %s1999_s20 = sshll.u32 %s522_s27, 3  ;;  %s2000_s14 = sshll.u32 %s2526_s28, 7 }
  0x55   : > { %s2779_s15 = scalar_select %p51_p9, %s2518_s26, %s53_s16  }
  0x56   : > { %s3128_s17 = sld [smem:[#allocation18_spill]]  ;;  %s526_s19 = scalar_lea.vmem [#allocation5], %s1999_s20 }
  0x57   : > { %s533_s9 = sshll.u32 %s526_s19, 4  ;;  %p2788_p2 = pnand %p2273_p3, %p62_p5  ;;  %s2792_s9 = int_to_ptr.vmem [resolvable:$true] %s533_s9 }
  0x58   : > { %s523_s16 = scalar_lea.sflag [#allocation6], %s522_s27 }
  0x59   : > { %p2416_p12 = pneg %p2788_p2 }
  0x5c   : > { %s2784_s23 = scalar_lea.hbm %s3128_s17, %s2000_s14  ;;  %s2419_s30 = scalar_lea.hbm %s3128_s17, 256 }
  0x5d   : > { %s2414_s24 = scalar_lea.hbm %s2784_s23, 128  ;;  %p2420_p4 = scmp.lt.u32.totalorder %s2784_s23, %s3128_s17 }
  0x5e   : > { %p2415_p11 = scmp.ne.s32.totalorder %s2784_s23, %s2414_s24  ;;  %p2421_p13 = scmp.lt.u32.totalorder %s2419_s30, %s2414_s24 }
  0x5f   : > { %p2423_p10 = scmp.lt.u32.totalorder %s2414_s24, %s2784_s23 }
  0x60   : > { %p2417_p0 = pnand %p2416_p12, %p2415_p11  ;;  %p2422_p6 = por %p2421_p13, %p2420_p4 }
  0x62   : > { %p2418_p1 = pneg %p2417_p0  ;;  %p2424_p3 = por %p2423_p10, %p2422_p6 }
  0x64   : > { %p2425_p5 = pnand %p2424_p3, %p2418_p1 }
  0x66   : > { %2428 = shalt.err (!%p2425_p5)
}
  0x67   : > { %s2429_s27 = scalar_lea.vmem %s2792_s9, 128  ;;  %s2536_s20 = smov [#allocation5]  }
  0x68   : > { %p2430_p9 = scmp.ne.s32.totalorder %s2792_s9, %s2429_s27  ;;  %s2434_s14 = sshll.u32 %s2536_s20, 4  ;;  %s2435_s14 = int_to_ptr.vmem [resolvable:$false] %s2434_s14 }
  0x69   : > { %s2436_s22 = scalar_lea.vmem %s2435_s14, 256  ;;  %p2437_p7 = scmp.lt.s32.totalorder %s2792_s9, %s2435_s14 }
  0x6a   : > { %p2432_p11 = pnand %p2430_p9, %p2416_p12  ;;  %p2438_p4 = scmp.lt.s32.totalorder %s2436_s22, %s2429_s27 }
  0x6c   : > { %p2433_p0 = pneg %p2432_p11  ;;  %p2439_p13 = por %p2438_p4, %p2437_p7 }
  0x6e   : > { %p2440_p6 = pnand %p2439_p13, %p2433_p0 }
  0x70   : > { %2443 = shalt.err (!%p2440_p6)
}
  0x71   : > { %2266 = dma.hbm_to_vmem [thread:$0]  (!%p2788_p2), %s2784_s23, 128, %s2792_s9, %s523_s16  }
  0x72   : > { %542 = sbr.rel (%p2691_p8) target bundleno = 2486 (0x9b6), region = 88  ;;  %s2822_s24 = sand.u32 (!%p2691_p8), 1, %s2514_s25  }
  0x73   : > { %s2002_s30 = sshll.u32 (!%p2691_p8), %s2822_s24, 3  ;;  %s545_s19 = scalar_lea.sflag (!%p2691_p8), [#allocation6], %s2822_s24 }
  0x74   : > { %s2828_s27 = scalar_lea.vmem (!%p2691_p8), [#allocation5], %s2002_s30  ;;  %p3130_p7 = scmp.ne.s32.totalorder (!%p2691_p8), %s3122_s1, 0 }
  0x79   : > { %2497 = dma.done.wait (%p3130_p7), %s545_s19, 128  }
  0x7a   : > { %2499 = vsyncadd (%p3130_p7), %s545_s19, 4294967168  ;;  %p3131_p2 = scmp.ne.s32.totalorder %s3120_s18, 0 }
  0x7c   : > { %2501 = dma.done.wait (%p3131_p2), [#allocation9], 1024  }
  0x7d   : > { %2503 = vsyncadd (%p3131_p2), [#allocation9], 4294966272  ;;  %v2537_v0 = vmov 0.0|0.0   ;;  %vm2538_vm0 = vmmov 0   ;;  %v2539_v1 = vmov 0.0   ;;  %s3132_s3 = sld [smem:[#allocation21_spill]] }
  0x7e   : > { %2202 = vmatprep.subr.bf16.mxu1 %v2537_v0  ;;  %2096 = vmatprep.mubr.msk.f32.mxu1 %vm2538_vm0, %v2539_v1  ;;  %s3133_s19 = sld [smem:[#allocation19_spill]]  ;;  %v697_v13 = vld [vmem:[%s3084_s5] sm:$0xff]  ;;  %v698_v14 = vld [vmem:[%s3084_s5 + $0x8] sm:$0xff]  ;;  %vm623_vm1 = vcmask 261120   ;;  %v699_v18 = vld [vmem:[%s3084_s5 + $0x10] sm:$0xff]  ;;  %s3134_s4 = sld [smem:[#allocation22_spill]] }
  0x7f   : > { %2214 = vmatprep.subr.bf16.mxu0 %v2537_v0  ;;  %2118 = vmatprep.mubr.msk.f32.mxu0 %vm2538_vm0, %v2539_v1  ;;  %v2877_v16 = vld [vmem:[%s2828_s27] sm:$0xff]  ;;  %v2209_v17 = vpack.c.bf16 %v698_v14, %v697_v13  ;;  %s3135_s2 = sld [smem:[#allocation20_spill]]  ;;  %vm870_vm2 = vcmask 64512   ;;  %s2540_s20 = smov 112   ;;  %vm1205_vm3 = vcmask 130112   ;;  %vm1380_vm4 = vcmask 195712  }
  0x80   : > { %v700_v19 = vld [vmem:[%s3084_s5 + $0x18] sm:$0xff]  ;;  %s2541_s14 = smov 120   ;;  %s2542_s22 = smov 104   ;;  %v2008_v30 = vld [vmem:[%s3085_s6] ss:$0 sm:$0xff]  ;;  %vm1555_vm5 = vcmask 261312  }
  0x81   : > { %v2212_v20 = vpack.c.bf16 %v700_v19, %v699_v18  ;;  %s2543_s21 = smov 8   ;;  %s2544_s23 = smov 16   ;;  %vm1773_vm6 = vcmask 523264  }
  0x82   : > { %s2545_s18 = smov 24   ;;  %s3139_s1 = sld [smem:[#allocation26_spill]] }
  0x83   : > { %v612_v2 = vld [vmem:[%s3132_s3] sm:$0xff]  ;;  %v613_v3 = vld [vmem:[%s3132_s3 + $0x8] sm:$0xff]  ;;  %v614_v4 = vld [vmem:[%s3132_s3 + $0x10] sm:$0xff]  ;;  %s3141_s9 = sld [smem:[#allocation27_spill]]  ;;  %p3144_p12 = scmp.ne.s32.totalorder %s3127_s0, 0 }
  0x84   : > { %v2203_v5 = vpack.c.bf16 %v613_v3, %v612_v2  ;;  %v615_v6 = vld [vmem:[%s3132_s3 + $0x18] sm:$0xff]  ;;  %v783_v7 = vld [vmem:[%s3133_s19] sm:$0xff]  ;;  %v784_v8 = vld [vmem:[%s3133_s19 + $0x8] sm:$0xff]  ;;  %s3143_s3 = sld [smem:[#allocation29_spill]] }
  0x85   : > { %v785_v9 = vld [vmem:[%s3133_s19 + $0x10] sm:$0xff]  ;;  %v786_v10 = vld [vmem:[%s3133_s19 + $0x18] sm:$0xff]  ;;  %v2206_v11 = vpack.c.bf16 %v615_v6, %v614_v4  ;;  %v2215_v12 = vpack.c.bf16 %v784_v8, %v783_v7  ;;  %v2006_v21 = vld [vmem:[%s3134_s4] ss:$0 sm:$0xff] }
  0x86   : > { %2204 = vmatpush3.bf16.msra.mxu1 %v2203_v5  ;;  %v2218_v15 = vpack.c.bf16 %v786_v10, %v785_v9  ;;  %v2010_v27 = vld [vmem:[%s3135_s2] ss:$0 sm:$0xff] }
  0x87   : > { %2205 = vmatprep.subr.bf16.mxu1 %v2537_v0  ;;  %2216 = vmatpush3.bf16.msra.mxu0 %v2215_v12 }
  0x88   : > { %2217 = vmatprep.subr.bf16.mxu0 %v2537_v0 }
  0x8a   : > { %2207 = vmatpush3.bf16.msra.mxu1 %v2206_v11 }
  0x8b   : > { %2208 = vmatprep.subr.bf16.mxu1 %v2537_v0  ;;  %2219 = vmatpush3.bf16.msra.mxu0 %v2218_v15 }
  0x8c   : > { %2131 = vmatprep.subr.mxu0 %v2539_v1 }
  0x8d   : > { %2097 = vmatmul.mubr.msk.f32.vlgmr.msra.gmra.mrb[0].mxu1 %vm623_vm1, %v2877_v16 }
  0x8e   : > { %2210 = vmatpush3.bf16.msra.mxu1 %v2209_v17  ;;  %2107 = vmatprep.mubr.msk.f32.mxu1 %vm2538_vm0, %v2539_v1 }
  0x8f   : > { %2119 = vmatmul.mubr.msk.f32.vlgmr.msra.gmra.mrb[0].mxu0 %vm623_vm1, %v2877_v16  ;;  %2211 = vmatprep.subr.bf16.mxu1 %v2537_v0 }
  0x90   : > { %2133 = vmatprep.mubr.msk.f32.mxu0 %vm2538_vm0, %v2539_v1 }
  0x92   : > { %2213 = vmatpush3.bf16.msra.mxu1 %v2212_v20 }
  0x93   : > { %2121 = vmatprep.subr.mxu1 %v2539_v1 }
  0x95   : > { %2108 = vmatmul.mubr.msk.f32.vlgmr.msra.gmra.mrb[2].mxu1 %vm623_vm1, %v2877_v16 }
  0x96   : > { %2123 = vmatprep.mubr.msk.f32.mxu1 %vm2538_vm0, %v2539_v1 }
 0x160   : > { %v693_v22 = vpop.f32.mrb[0].mxu1 }
 0x161   : > { %v694_v23 = vadd.f32 %v2006_v21, %v693_v22  ;;  %v2098_v24 = vpop.f32.mrb[1].mxu1 }
 0x162   : > { %v864_v25 = vpop.f32.mrb[0].mxu0  ;;  %v1559_v24 = vld [vmem:[#allocation8 + $0x8] sm:$0xff] }
 0x163   : > { %778 = vst.msk [vmem:[#allocation2] sm:$0xff] %vm623_vm1, %v694_v23  ;;  %v2120_v26 = vpop.f32.mrb[1].mxu0  ;;  %v865_v29 = vadd.f32 %v2010_v27, %v864_v25  ;;  %v1558_v23 = vld [vmem:[#allocation8] sm:$0xff]  ;;  %v1561_v27 = vld [vmem:[#allocation8 + $0x18] sm:$0xff] }
 0x164   : > { %v2221_v25 = vpack.c.bf16 %v1559_v24, %v1558_v23  ;;  %v1560_v26 = vld [vmem:[#allocation8 + $0x10] sm:$0xff]  ;;  %v2030_v24 = vld [vmem:[%s3139_s1] ss:$0 sm:$0xff] }
 0x168   : > { %v774_v31 = vpop.f32.mrb[2].mxu1 }
 0x169   : > { %v775_v32 = vadd.f32 %v2008_v30, %v774_v31  ;;  %v2109_v33 = vpop.f32.mrb[3].mxu1  ;;  %v2224_v30 = vpack.c.bf16 %v1561_v27, %v1560_v26 }
 0x16a   : > { %v1207_v28 = vld [vmem:[#allocation2] sm:$0xff] }
 0x16b   : > { %1212 = vrot.lane.b32.xlu1 %v1207_v28, %s2540_s20  ;;  %1037 = vrot.lane.b32.xlu0 %v1207_v28, %s2541_s14  ;;  %779 = vst.msk [vmem:[#allocation3] sm:$0xff] %vm623_vm1, %v775_v32 }
 0x16c   : > { %2122 = vmatpush3.xpose.msk.msra.mxu1 %vm870_vm2, %v1207_v28 }
 0x16d   : > { %2126 = vmatprep.subr.mxu1 %v2539_v1 }
 0x16f   : > { %2124 = vmatmul.mubr.msk.f32.vlgmr.msra.gmra.mrb[4].mxu1 %vm870_vm2, %v865_v29  ;;  %1209 = vrot.lane.b32.xlu1 %v865_v29, %s2540_s20 }
 0x170   : > { %1034 = vrot.lane.b32.xlu0 %v865_v29, %s2541_s14  ;;  %2128 = vmatprep.mubr.msk.f32.mxu1 %vm2538_vm0, %v2539_v1 }
 0x172   : > { %v1033_v34 = vld [vmem:[#allocation3] sm:$0xff] }
 0x173   : > { %1384 = vrot.lane.b32.xlu1 %v865_v29, %s2542_s22  ;;  %2127 = vmatpush3.msra.mxu1 %v1033_v34 }
 0x174   : > { %1387 = vrot.lane.b32.xlu0 %v1207_v28, %s2542_s22  ;;  %2136 = vmatprep.subr.mxu1 %v2539_v1 }
 0x177   : > { %1123 = vrot.lane.b32.xlu1 %v1033_v34, %s2541_s14  ;;  %s3138_s14 = sld [smem:[#allocation25_spill]] }
 0x1dd   : > { %v1038_v35 = vpop.permute.xlu0 %1037  ;;  %v1213_v36 = vpop.permute.xlu1 %1212 }
 0x1de   : > { %2132 = vmatpush3.xpose.msk.msra.mxu0 %vm870_vm2, %v1038_v35 }
 0x1df   : > { %2141 = vmatprep.subr.mxu0 %v2539_v1 }
 0x1e1   : > { %v1210_v38 = vpop.permute.xlu1 %1209 }
 0x1e2   : > { %v1035_v37 = vpop.permute.xlu0 %1034 }
 0x1e3   : > { %2134 = vmatmul.mubr.msk.f32.vlgmr.msra.gmra.mrb[2].mxu0 %vm870_vm2, %v1035_v37 }
 0x1e4   : > { %2142 = vmatpush3.xpose.msk.msra.mxu0 %vm870_vm2, %v1213_v36  ;;  %2143 = vmatprep.mubr.msk.f32.mxu0 %vm2538_vm0, %v2539_v1 }
 0x1e5   : > { %2151 = vmatprep.subr.mxu0 %v2539_v1  ;;  %v1385_v40 = vpop.permute.xlu1 %1384 }
 0x1e6   : > { %v1388_v39 = vpop.permute.xlu0 %1387 }
 0x1e7   : > { %2144 = vmatmul.mubr.msk.f32.vlgmr.msra.gmra.mrb[4].mxu0 %vm870_vm2, %v1210_v38 }
 0x1e8   : > { %2152 = vmatpush3.xpose.msk.msra.mxu0 %vm870_vm2, %v1388_v39  ;;  %2153 = vmatprep.mubr.msk.f32.mxu0 %vm2538_vm0, %v2539_v1 }
 0x1e9   : > { %2220 = vmatprep.subr.bf16.mxu0 %v2537_v0  ;;  %v1124_v56 = vpop.permute.xlu1 %1123 }
 0x1eb   : > { %2154 = vmatmul.mubr.msk.f32.vlgmr.msra.gmra.mrb[6].mxu0 %vm870_vm2, %v1385_v40 }
 0x1ec   : > { %2169 = vmatprep.mubr.msk.f32.mxu0 %vm2538_vm0, %v2539_v1  ;;  %2222 = vmatpush3.bf16.msra.mxu0 %v2221_v25 }
 0x1ed   : > { %2223 = vmatprep.subr.bf16.mxu0 %v2537_v0 }
 0x1f0   : > { %2225 = vmatpush3.bf16.msra.mxu0 %v2224_v30 }
 0x1f1   : > { %2232 = vmatprep.subr.bf16.mxu0 %v2537_v0 }
 0x242   : > { %v943_v41 = vpop.f32.mrb[4].mxu1 }
 0x243   : > { %v2125_v42 = vpop.f32.mrb[5].mxu1  ;;  %v947_v43 = vsel %vm870_vm2, %v943_v41, -inf }
 0x244   : > { %948 = vmax.xlane.f32.xlu0 %v947_v43 }
 0x2b6   : > { %v1109_v44 = vpop.f32.mrb[2].mxu0 }
 0x2b7   : > { %v2135_v45 = vpop.f32.mrb[3].mxu0  ;;  %v1113_v46 = vsel %vm870_vm2, %v1109_v44, -inf }
 0x2b8   : > { %1114 = vmax.xlane.f32.xlu1 %v1113_v46  ;;  %v2024_v45 = vld [vmem:[%s3087_s8] ss:$0 sm:$0xff] }
 0x2ba   : > { %v1284_v47 = vpop.f32.mrb[4].mxu0 }
 0x2bb   : > { %v2145_v48 = vpop.f32.mrb[5].mxu0  ;;  %v1288_v49 = vsel %vm870_vm2, %v1284_v47, -inf }
 0x2bc   : > { %1289 = vmax.xlane.f32.xlu0 %v1288_v49 }
 0x2be   : > { %v1459_v50 = vpop.f32.mrb[6].mxu0 }
 0x2bf   : > { %v2155_v51 = vpop.f32.mrb[7].mxu0  ;;  %v1463_v52 = vsel %vm870_vm2, %v1459_v50, -inf }
 0x2c0   : > { %1464 = vmax.xlane.f32.xlu0 %v1463_v52 }
 0x2c9   : > { %1473 = vrot.lane.b32.xlu1 %v1033_v34, %s2542_s22  ;;  %s3136_s22 = sld [smem:[#allocation23_spill]] }
 0x2d1   : > { %v949_v53 = vpop.xlane.xlu0 %948 }
 0x2d2   : > { %v950_v54 = vsub.f32 %v943_v41, %v949_v53 }
 0x2d4   : > { %v951_v55 = vmul.f32 1.442695, %v950_v54 }
 0x2d6   : > { %2338 = vpow2.f32 %v951_v55  ;;  %1298 = vrot.lane.b32.xlu0 %v1033_v34, %s2540_s20  ;;  %s3142_s20 = sld [smem:[#allocation28_spill]] }
 0x2e0   : > { %v2339_v57 = vpop.eup %2338 }
 0x2e1   : > { %2129 = vmatmul.mubr.msk.f32.vlgmr.msra.gmra.mrb[6].mxu1 %vm870_vm2, %v2339_v57  ;;  %v953_v10 = vsel %vm870_vm2, %v2339_v57, 0.0 }
 0x2e2   : > { %2137 = vmatpush3.msra.mxu1 %v1124_v56  ;;  %2138 = vmatprep.mubr.msk.f32.mxu1 %vm2538_vm0, %v2539_v1  ;;  %v1674_v56 = vld [vmem:[#allocation10 + $0x8] sm:$0xff] }
 0x2e3   : > { %2146 = vmatprep.subr.mxu1 %v2539_v1 }
 0x345   : > { %v1115_v58 = vpop.xlane.xlu1 %1114 }
 0x346   : > { %v1116_v59 = vsub.f32 %v1109_v44, %v1115_v58  ;;  %v1675_v58 = vld [vmem:[#allocation10 + $0x10] sm:$0xff] }
 0x348   : > { %v1117_v60 = vmul.f32 1.442695, %v1116_v59  ;;  %v1676_v59 = vld [vmem:[#allocation10 + $0x18] sm:$0xff] }
 0x349   : > { %v1290_v61 = vpop.xlane.xlu0 %1289  ;;  %v1474_v9 = vpop.permute.xlu1 %1473 }
 0x34a   : > { %2340 = vpow2.f32 %v1117_v60  ;;  %v1291_v62 = vsub.f32 %v1284_v47, %v1290_v61  ;;  %v2230_v60 = vpack.c.bf16 %v1676_v59, %v1675_v58  ;;  %v1759_v61 = vld [vmem:[%s3092_s13 + $0x8] sm:$0xff] }
 0x34c   : > { %v1292_v63 = vmul.f32 1.442695, %v1291_v62  ;;  %v1760_v62 = vld [vmem:[%s3092_s13 + $0x10] sm:$0xff] }
 0x34d   : > { %v1465_v2 = vpop.xlane.xlu0 %1464 }
 0x34e   : > { %2342 = vpow2.f32 %v1292_v63  ;;  %v1466_v3 = vsub.f32 %v1459_v50, %v1465_v2  ;;  %v1761_v2 = vld [vmem:[%s3092_s13 + $0x18] sm:$0xff] }
 0x350   : > { %v1467_v4 = vmul.f32 1.442695, %v1466_v3  ;;  %v2236_v3 = vpack.c.bf16 %v1761_v2, %v1760_v62 }
 0x351   : > { %v1299_v6 = vpop.permute.xlu0 %1298 }
 0x352   : > { %2344 = vpow2.f32 %v1467_v4  ;;  %v1762_v4 = vld [vmem:[%s3092_s13 + $0x20] sm:$0xff] }
 0x354   : > { %v2341_v5 = vpop.eup %2340 }
 0x355   : > { %2139 = vmatmul.mubr.msk.f32.vlgmr.msra.gmra.mrb[8].mxu1 %vm870_vm2, %v2341_v5  ;;  %v1119_v7 = vsel %vm870_vm2, %v2341_v5, 0.0  ;;  %v1763_v5 = vld [vmem:[%s3092_s13 + $0x28] sm:$0xff] }
 0x356   : > { %2147 = vmatpush3.msra.mxu1 %v1299_v6  ;;  %1120 = vadd.xlane.f32.xlu1 %v1119_v7  ;;  %v2239_v6 = vpack.c.bf16 %v1763_v5, %v1762_v4 }
 0x357   : > { %2148 = vmatprep.mubr.msk.f32.mxu1 %vm2538_vm0, %v2539_v1  ;;  %2156 = vmatprep.subr.mxu1 %v2539_v1 }
 0x358   : > { %v2343_v8 = vpop.eup %2342 }
 0x359   : > { %2149 = vmatmul.mubr.msk.f32.vlgmr.msra.gmra.mrb[10].mxu1 %vm870_vm2, %v2343_v8  ;;  %v1294_v11 = vsel %vm870_vm2, %v2343_v8, 0.0 }
 0x35a   : > { %2157 = vmatpush3.msra.mxu1 %v1474_v9  ;;  %954 = vadd.xlane.f32.xlu1 %v953_v10 }
 0x35b   : > { %1295 = vadd.xlane.f32.xlu0 %v1294_v11  ;;  %2158 = vmatprep.mubr.msk.f32.mxu1 %vm2538_vm0, %v2539_v1  ;;  %v2026_v11 = vld [vmem:[%s3136_s22] ss:$0 sm:$0xff]  ;;  %s606_s22 = scalar_lea.vmem [#allocation11], %s2002_s30  ;;  %s2546_s30 = smov [#allocation11]  }
 0x35c   : > { %v2345_v12 = vpop.eup %2344  ;;  %2226 = vmatprep.subr.bf16.mxu1 %v2537_v0  ;;  %s1893_s27 = sshll.u32 %s606_s22, 4  ;;  %s3031_s27 = int_to_ptr.vmem [resolvable:$true] %s1893_s27 }
 0x35d   : > { %2159 = vmatmul.mubr.msk.f32.vlgmr.msra.gmra.mrb[12].mxu1 %vm870_vm2, %v2345_v12  ;;  %v1469_v13 = vsel %vm870_vm2, %v2345_v12, 0.0 }
 0x35e   : > { %2180 = vmatprep.mubr.msk.f32.mxu1 %vm2538_vm0, %v2539_v1 }
 0x35f   : > { %1470 = vadd.xlane.f32.xlu0 %v1469_v13 }
 0x3b4   : > { %v1025_v14 = vpop.f32.mrb[6].mxu1 }
 0x3b5   : > { %v2130_v15 = vpop.f32.mrb[7].mxu1 }
 0x3e3   : > { %v1121_v17 = vpop.xlane.xlu1 %1120 }
 0x3e7   : > { %v955_v18 = vpop.xlane.xlu1 %954 }
 0x3e8   : > { %2346 = vrcp.f32 %v955_v18  ;;  %v1296_v21 = vpop.xlane.xlu0 %1295 }
 0x3e9   : > { %2348 = vrcp.f32 %v1121_v17  ;;  %v1765_v17 = vld [vmem:[%s3092_s13 + $0x38] sm:$0xff] }
 0x3ea   : > { %2350 = vrcp.f32 %v1296_v21 }
 0x3ec   : > { %v1471_v22 = vpop.xlane.xlu0 %1470 }
 0x3ed   : > { %2352 = vrcp.f32 %v1471_v22 }
 0x3f2   : > { %v2347_v19 = vpop.eup %2346 }
 0x3f3   : > { %v1030_v20 = vmul.f32 %v2347_v19, %v1025_v14  ;;  %v2349_v28 = vpop.eup %2348  ;;  %v2028_v19 = vld [vmem:[%s3138_s14] ss:$0 sm:$0xff] }
 0x3f4   : > { %v2351_v33 = vpop.eup %2350 }
 0x3f5   : > { %1031 = vst.msk [vmem:[#allocation4] sm:$0xff] %vm870_vm2, %v1030_v20 }
 0x3f7   : > { %v2353_v37 = vpop.eup %2352 }
 0x428   : > { %v1195_v29 = vpop.f32.mrb[8].mxu1 }
 0x429   : > { %v1200_v31 = vmul.f32 %v2349_v28, %v1195_v29  ;;  %v2140_v32 = vpop.f32.mrb[9].mxu1 }
 0x42b   : > { %1202 = vrot.lane.b32.xlu0 %v1200_v31, %s2543_s21  ;;  %s3137_s21 = sld [smem:[#allocation24_spill]] }
 0x42c   : > { %v1370_v34 = vpop.f32.mrb[10].mxu1 }
 0x42d   : > { %v1375_v35 = vmul.f32 %v2351_v33, %v1370_v34  ;;  %v2150_v36 = vpop.f32.mrb[11].mxu1 }
 0x42f   : > { %1377 = vrot.lane.b32.xlu1 %v1375_v35, %s2544_s23  ;;  %s1879_s23 = scalar_lea.sflag [#allocation7], %s2822_s24 }
 0x430   : > { %v1545_v38 = vpop.f32.mrb[12].mxu1 }
 0x431   : > { %v1550_v39 = vmul.f32 %v2353_v37, %v1545_v38  ;;  %v2160_v40 = vpop.f32.mrb[13].mxu1  ;;  %v2027_v13 = vld [vmem:[%s3137_s21] ss:$0 sm:$0xff]  ;;  %s3140_s21 = sld [smem:[#allocation16_spill]] }
 0x433   : > { %1552 = vrot.lane.b32.xlu1 %v1550_v39, %s2545_s18  ;;  %v2032_v39 = vld [vmem:[%s3141_s9] ss:$0 sm:$0xff]  ;;  %s2444_s18 = scalar_lea.vmem %s3031_s27, 128 }
 0x434   : > { %p2445_p8 = scmp.ne.s32.totalorder %s3031_s27, %s2444_s18 }
 0x436   : > { %p2446_p1 = pnand %p2445_p8, %p3144_p12 }
 0x437   : > { %s2035_s14 = sshll.u32 %s3140_s21, 7  ;;  %s2448_s21 = sshll.u32 %s2546_s30, 4  ;;  %s2449_s21 = int_to_ptr.vmem [resolvable:$false] %s2448_s21 }
 0x438   : > { %s3029_s4 = scalar_lea.hbm %s3143_s3, %s2035_s14  ;;  %p2447_p10 = pneg %p2446_p1 }
 0x439   : > { %s2450_s9 = scalar_lea.vmem %s2449_s21, 256  ;;  %p2451_p3 = scmp.lt.s32.totalorder %s3031_s27, %s2449_s21 }
 0x43a   : > { %p2452_p5 = scmp.lt.s32.totalorder %s2450_s9, %s2444_s18 }
 0x43c   : > { %p2453_p9 = por %p2452_p5, %p2451_p3 }
 0x43e   : > { %p2454_p11 = pnand %p2453_p9, %p2447_p10 }
 0x49d   : > { %v1203_v41 = vpop.permute.xlu0 %1202 }
 0x49e   : > { %1206 = vst.msk [vmem:[#allocation4] sm:$0xff] %vm1205_vm3, %v1203_v41  ;;  %v2033_v41 = vld [vmem:[%s3142_s20] ss:$0 sm:$0xff] }
 0x4a1   : > { %v1378_v42 = vpop.permute.xlu1 %1377 }
 0x4a2   : > { %1381 = vst.msk [vmem:[#allocation4] sm:$0xff] %vm1380_vm4, %v1378_v42 }
 0x4a5   : > { %v1553_v43 = vpop.permute.xlu1 %1552 }
 0x4a6   : > { %1556 = vst.msk [vmem:[#allocation4] sm:$0xff] %vm1555_vm5, %v1553_v43 }
 0x4ad   : > { %v1557_v44 = vld [vmem:[#allocation4] sm:$0xff] }
 0x4ae   : > { %2170 = vmatmul.mubr.msk.f32.vlgmr.msra.gmra.mrb[8].mxu0 %vm623_vm1, %v1557_v44 }
 0x4af   : > { %2199 = vmatprep.mubr.msk.f32.mxu0 %vm2538_vm0, %v2539_v1  ;;  %v1673_v1 = vld [vmem:[#allocation10] sm:$0xff] }
 0x4b0   : > { %v2227_v57 = vpack.c.bf16 %v1674_v56, %v1673_v1 }
 0x4b2   : > { %2228 = vmatpush3.bf16.msra.mxu1 %v2227_v57 }
 0x4b3   : > { %2229 = vmatprep.subr.bf16.mxu1 %v2537_v0 }
 0x4b6   : > { %2231 = vmatpush3.bf16.msra.mxu1 %v2230_v60 }
 0x581   : > { %v1638_v46 = vpop.f32.mrb[8].mxu0 }
 0x582   : > { %v1639_v47 = vadd.f32 %v2024_v45, %v1638_v46  ;;  %v2171_v48 = vpop.f32.mrb[9].mxu0 }
 0x584   : > { %v1642_v49 = vadd.f32 %v1639_v47, %v2877_v16  ;;  %v1758_v16 = vld [vmem:[%s3092_s13] sm:$0xff] }
 0x585   : > { %v2233_v63 = vpack.c.bf16 %v1759_v61, %v1758_v16 }
 0x586   : > { %v1645_v50 = vsel %vm623_vm1, %v1642_v49, 0.0 }
 0x587   : > { %1646 = vadd.xlane.f32.xlu0 %v1645_v50  ;;  %2234 = vmatpush3.bf16.msra.mxu0 %v2233_v63 }
 0x588   : > { %2235 = vmatprep.subr.bf16.mxu0 %v2537_v0 }
 0x58b   : > { %2237 = vmatpush3.bf16.msra.mxu0 %v2236_v3 }
 0x58c   : > { %2238 = vmatprep.subr.bf16.mxu0 %v2537_v0 }
 0x58f   : > { %2240 = vmatpush3.bf16.msra.mxu0 %v2239_v6 }
 0x590   : > { %2241 = vmatprep.subr.bf16.mxu0 %v2537_v0  ;;  %v1764_v0 = vld [vmem:[%s3092_s13 + $0x30] sm:$0xff] }
 0x591   : > { %v2242_v18 = vpack.c.bf16 %v1765_v17, %v1764_v0 }
 0x593   : > { %2243 = vmatpush3.bf16.msra.mxu0 %v2242_v18 }
 0x614   : > { %v1647_v51 = vpop.xlane.xlu0 %1646 }
 0x615   : > { %v1649_v52 = vmul.f32 0.03125, %v1647_v51 }
 0x617   : > { %v1650_v53 = vsub.f32 %v1642_v49, %v1649_v52 }
 0x619   : > { %v1651_v54 = vmul.f32 %v1650_v53, %v1650_v53 }
 0x61b   : > { %v1652_v55 = vsel %vm623_vm1, %v1651_v54, 0.0 }
 0x61c   : > { %1653 = vadd.xlane.f32.xlu1 %v1652_v55 }
 0x6a9   : > { %v1654_v7 = vpop.xlane.xlu1 %1653 }
 0x6aa   : > { %v1655_v8 = vmul.f32 0.03125, %v1654_v7 }
 0x6ac   : > { %v1656_v9 = vadd.f32 1e-12, %v1655_v8 }
 0x6ae   : > { %2354 = vrsqrt.f32 %v1656_v9 }
 0x6b8   : > { %v2355_v10 = vpop.eup %2354 }
 0x6b9   : > { %v1658_v12 = vmul.f32 %v2355_v10, %v1650_v53 }
 0x6bb   : > { %v1665_v14 = vmul.f32 %v2026_v11, %v1658_v12 }
 0x6bd   : > { %v1672_v15 = vadd.f32 %v2027_v13, %v1665_v14 }
 0x6bf   : > { %2181 = vmatmul.mubr.msk.f32.vlgmr.msra.gmra.mrb[14].mxu1 %vm623_vm1, %v1672_v15 }
 0x792   : > { %v1753_v20 = vpop.f32.mrb[14].mxu1 }
 0x793   : > { %v1754_v21 = vadd.f32 %v2028_v19, %v1753_v20  ;;  %v2182_v22 = vpop.f32.mrb[15].mxu1 }
 0x795   : > { %v1757_v23 = vmax.f32 %v1754_v21, 0.0 }
 0x797   : > { %2200 = vmatmul.mubr.msk.f32.vlgmr.msra.gmra.mrb[10].mxu0 %vm1773_vm6, %v1757_v23 }
 0x86a   : > { %v1843_v25 = vpop.f32.mrb[10].mxu0 }
 0x86b   : > { %v1844_v26 = vadd.f32 %v2030_v24, %v1843_v25  ;;  %v2201_v27 = vpop.f32.mrb[11].mxu0 }
 0x86d   : > { %v1847_v28 = vadd.f32 %v1844_v26, %v1672_v15 }
 0x86f   : > { %v1850_v29 = vsel %vm623_vm1, %v1847_v28, 0.0 }
 0x870   : > { %1851 = vadd.xlane.f32.xlu0 %v1850_v29 }
 0x8fd   : > { %v1852_v30 = vpop.xlane.xlu0 %1851 }
 0x8fe   : > { %v1853_v31 = vmul.f32 0.03125, %v1852_v30 }
 0x900   : > { %v1854_v32 = vsub.f32 %v1847_v28, %v1853_v31 }
 0x902   : > { %v1855_v33 = vmul.f32 %v1854_v32, %v1854_v32 }
 0x904   : > { %v1856_v34 = vsel %vm623_vm1, %v1855_v33, 0.0 }
 0x905   : > { %1857 = vadd.xlane.f32.xlu0 %v1856_v34 }
 0x992   : > { %v1858_v35 = vpop.xlane.xlu0 %1857 }
 0x993   : > { %v1859_v36 = vmul.f32 0.03125, %v1858_v35 }
 0x995   : > { %v1860_v37 = vadd.f32 1e-12, %v1859_v36 }
 0x997   : > { %2356 = vrsqrt.f32 %v1860_v37 }
 0x9a1   : > { %v2357_v38 = vpop.eup %2356 }
 0x9a2   : > { %v1862_v40 = vmul.f32 %v2357_v38, %v1854_v32 }
 0x9a4   : > { %v1869_v42 = vmul.f32 %v2032_v39, %v1862_v40 }
 0x9a6   : > { %v1876_v43 = vadd.f32 %v2033_v41, %v1869_v42 }
 0x9a8   : > { %1877 = vst.msk [vmem:[%s606_s22] sm:$0xff] %vm623_vm1, %v1876_v43 }
 0x9a9   : > { %2457 = shalt.err (!%p2454_p11)
}
 0x9aa   : > { %s2458_s2 = scalar_lea.hbm %s3029_s4, 128  ;;  %s2462_s16 = scalar_lea.hbm %s3143_s3, 256 }
 0x9ab   : > { %p2459_p0 = scmp.ne.s32.totalorder %s3029_s4, %s2458_s2  ;;  %p2463_p6 = scmp.lt.u32.totalorder %s3029_s4, %s3143_s3 }
 0x9ac   : > { %p2464_p7 = scmp.lt.u32.totalorder %s2462_s16, %s2458_s2  ;;  %p2466_p8 = scmp.lt.u32.totalorder %s2458_s2, %s3029_s4 }
 0x9ad   : > { %p2460_p4 = pnand %p2459_p0, %p3144_p12 }
 0x9ae   : > { %p2465_p2 = por %p2464_p7, %p2463_p6 }
 0x9af   : > { %p2461_p13 = pneg %p2460_p4 }
 0x9b0   : > { %p2467_p1 = por %p2466_p8, %p2465_p2 }
 0x9b2   : > { %p2468_p10 = pnand %p2467_p1, %p2461_p13 }
 0x9b4   : > { %2471 = shalt.err (!%p2468_p10)
}
 0x9b5   : > { %2254 = dma.vmem_to_hbm [thread:$0]  (%p3144_p12), %s3031_s27, 128, %s3029_s4, %s1879_s23  }
 0x9b6 PF: > { %s3145_s22 = sld [smem:[#allocation15_spill]]  ;;  %s3146_s1 = sld [smem:[#allocation17_spill]] }
 0x9b7   : > { %p3148_p5 = scmp.ge.s32.totalorder %s2530_s29, 2 }
 0x9bc   : > { %s1905_s18 = sand.u32 1, %s3145_s22   ;;  %p3147_p3 = scmp.ne.s32.totalorder %s3146_s1, 0 }
 0x9bd   : > { %s1906_s30 = scalar_lea.sflag [#allocation7], %s1905_s18 }
 0x9be   : > { %p2268_p9 = pnand %p3148_p5, %p3147_p3 }
 0x9c0   : > { %2505 = dma.done.wait (!%p2268_p9), %s1906_s30, 128  }
 0x9c1   : > { %2507 = vsyncadd (!%p2268_p9), %s1906_s30, 4294967168  ;;  %s34_s29 = sadd.s32 1, %s2530_s29   ;;  %s3149_s24 = smov %s2514_s25 }
 0x9c2   : > { %p31_p11 = scmp.ge.s32.totalorder %s34_s29, 4   ;;  %s3150_s25 = smov %s2518_s26 }
 0x9c3   : > { %s3151_s26 = smov %s2779_s15  ;;  %s3152_s27 = smov %s2526_s28 }
 0x9c4   : > { %s3153_s28 = smov %s3155_s12  ;;  %33 = sbr.rel (!%p31_p11) target bundleno = 20 (0x14), region = 146 }
 0x9cb   :  { %1911 = vsyncpa [#allocation6], 1 }
 0x9cc   :  { %1913 = vsyncpa [#allocation6 + $0x1], 1 }
 0x9cd   :  { %1914 = vsyncpa [#allocation9], 1 }
 0x9ce   :  { %1915 = vsyncpa [#allocation7], 1 }
 0x9cf   :  { %1917 = vsyncpa [#allocation7 + $0x1], 1 }

</bundles_post_ra>
